<compile_context>
chip_gen: v6e
topology: v6e:2x2x1
jax: 0.10.0
libtpu: 0.0.40
codegen_flags: <defaults>
</compile_context>

<pallas_src>
import math

import jax
import jax.numpy as jnp
from jax.experimental import pallas as pl
from jax.experimental.pallas import tpu as pltpu


# ----------------------------------------------------------------------------
# Kernel 1: fused per-timestep conversational RNN (both directions, whole scan)
# ----------------------------------------------------------------------------
def _rnn_scan_kernel(feat_ref, mask_ref,
                     g_wih_ref, g_whh_ref, g_bih_ref, g_bhh_ref,
                     p_wih_ref, p_whh_ref, p_bih_ref, p_bhh_ref,
                     attn_w_ref,
                     sel_ref,
                     hist_ref, glob_ref, spk_ref):
    """One timestep of one direction.

    Blocks (leading singleton dims are the direction / time grid axes):
      feat_ref: (1, 1, B, F)   mask_ref: (1, 1, B, P)
      g_*_ref : (1, 3, ...)    per-gate (r, z, n) global-cell weights of this direction
      p_*_ref : (1, 3, ...)    per-gate party-cell weights of this direction
      attn_w_ref: (1, F, G)    Attention transform, Linear(F, G, bias=False) stored transposed
      sel_ref : (1, 1, B, S)   selected (updated) speaker state -> feeds the emotion GRU
    Scratch (persists across the time axis, reset at t == 0):
      hist_ref: (T, B, G)   glob_ref: (B, G)   spk_ref: (P, B, S)
    """
    t = pl.program_id(1)

    @pl.when(t == 0)
    def _init():
        hist_ref[...] = jnp.zeros_like(hist_ref)
        glob_ref[...] = jnp.zeros_like(glob_ref)
        spk_ref[...] = jnp.zeros_like(spk_ref)

    feat = feat_ref[...][0, 0]            # (B, F)
    smask = mask_ref[...][0, 0]           # (B, P)
    glob_prev = glob_ref[...]             # (B, G)
    spk_prev = spk_ref[...]               # (P, B, S)
    hist = hist_ref[...]                  # (T, B, G)

    g_wih = g_wih_ref[...][0]             # (3, F+S, G)
    g_whh = g_whh_ref[...][0]             # (3, G, G)
    g_bih = g_bih_ref[...][0]             # (3, 1, G)
    g_bhh = g_bhh_ref[...][0]
    p_wih = p_wih_ref[...][0]             # (3, F+G, S)
    p_whh = p_whh_ref[...][0]             # (3, S, S)
    p_bih = p_bih_ref[...][0]
    p_bhh = p_bhh_ref[...][0]
    attn_w = attn_w_ref[...][0]           # (F, G)

    n_party, batch, s_dim = spk_prev.shape
    seq_len = hist.shape[0]

    # ---- previous state of the active party: one-hot masked sum (no gather) ----
    sel_prev = jnp.zeros((batch, s_dim), jnp.float32)
    for p in range(n_party):
        sel_prev = sel_prev + smask[:, p:p + 1] * spk_prev[p]

    # ---- global GRU cell ----
    x_g = jnp.concatenate([feat, sel_prev], axis=1)                      # (B, F+S)
    gi_r = jnp.dot(x_g, g_wih[0], preferred_element_type=jnp.float32) + g_bih[0]
    gi_z = jnp.dot(x_g, g_wih[1], preferred_element_type=jnp.float32) + g_bih[1]
    gi_n = jnp.dot(x_g, g_wih[2], preferred_element_type=jnp.float32) + g_bih[2]
    gh_r = jnp.dot(glob_prev, g_whh[0], preferred_element_type=jnp.float32) + g_bhh[0]
    gh_z = jnp.dot(glob_prev, g_whh[1], preferred_element_type=jnp.float32) + g_bhh[1]
    gh_n = jnp.dot(glob_prev, g_whh[2], preferred_element_type=jnp.float32) + g_bhh[2]
    r = jax.nn.sigmoid(gi_r + gh_r)
    z = jax.nn.sigmoid(gi_z + gh_z)
    n = jnp.tanh(gi_n + r * gh_n)
    g_new = (1.0 - z) * n + z * glob_prev                                # (B, G)

    # ---- context attention over global history at steps < t (softmax over time) ----
    xw = jnp.dot(feat, attn_w, preferred_element_type=jnp.float32)       # (B, G)
    scores = jnp.sum(hist * xw[None, :, :], axis=-1)                     # (T, B)
    valid = jax.lax.broadcasted_iota(jnp.int32, (seq_len, batch), 0) < t
    scores = jnp.where(valid, scores, -1e30)
    mx = jnp.max(scores, axis=0, keepdims=True)
    pexp = jnp.exp(scores - mx)
    alpha = pexp / jnp.sum(pexp, axis=0, keepdims=True)                  # (T, B)
    ctx = jnp.sum(alpha[:, :, None] * hist, axis=0)                      # (B, G)
    ctx = jnp.where(t > 0, ctx, jnp.zeros_like(ctx))                     # reference: zeros at t==0

    # ---- party GRU cell: one input row per batch element, shared by all parties ----
    x_p = jnp.concatenate([feat, ctx], axis=1)                           # (B, F+G)
    pi_r = jnp.dot(x_p, p_wih[0], preferred_element_type=jnp.float32) + p_bih[0]
    pi_z = jnp.dot(x_p, p_wih[1], preferred_element_type=jnp.float32) + p_bih[1]
    pi_n = jnp.dot(x_p, p_wih[2], preferred_element_type=jnp.float32) + p_bih[2]

    sel_new = jnp.zeros((batch, s_dim), jnp.float32)
    for p in range(n_party):
        h_p = spk_prev[p]                                                # (B, S)
        ph_r = jnp.dot(h_p, p_whh[0], preferred_element_type=jnp.float32) + p_bhh[0]
        ph_z = jnp.dot(h_p, p_whh[1], preferred_element_type=jnp.float32) + p_bhh[1]
        ph_n = jnp.dot(h_p, p_whh[2], preferred_element_type=jnp.float32) + p_bhh[2]
        pr = jax.nn.sigmoid(pi_r + ph_r)
        pz = jax.nn.sigmoid(pi_z + ph_z)
        pn = jnp.tanh(pi_n + pr * ph_n)
        cand = (1.0 - pz) * pn + pz * h_p
        m = smask[:, p:p + 1]                                            # (B, 1) one-hot column
        upd = h_p * (1.0 - m) + cand * m                                 # listener keeps its state
        spk_ref[p] = upd
        sel_new = sel_new + m * upd          # == select_parties(speaker_new, argmax(mask))

    # ---- commit recurrent state, emit selected speaker state ----
    hist_ref[t] = g_new
    glob_ref[...] = g_new
    sel_ref[...] = sel_new[None, None, :, :]


def run_rnn_scan(rnn_p, feats, masks):
    """feats: (2, T, B, F), masks: (2, T, B, P) -> selected speaker states (2, T, B, S)."""
    n_dir, seq_len, batch, f_dim = feats.shape
    n_party = masks.shape[-1]
    g_dim = rnn_p["g_whh"].shape[-1]
    s_dim = rnn_p["p_whh"].shape[-1]

    x_map = lambda d, t: (d, t, 0, 0)      # per-(direction, time) blocks
    w_map = lambda d, t: (d, 0, 0, 0)      # per-direction weights (re-fetched only on d change)
    a_map = lambda d, t: (d, 0, 0)

    return pl.pallas_call(
        _rnn_scan_kernel,
        out_shape=jax.ShapeDtypeStruct((n_dir, seq_len, batch, s_dim), jnp.float32),
        grid=(n_dir, seq_len),
        in_specs=[
            pl.BlockSpec((1, 1, batch, f_dim), x_map),
            pl.BlockSpec((1, 1, batch, n_party), x_map),
            pl.BlockSpec((1, 3, f_dim + s_dim, g_dim), w_map),
            pl.BlockSpec((1, 3, g_dim, g_dim), w_map),
            pl.BlockSpec((1, 3, 1, g_dim), w_map),
            pl.BlockSpec((1, 3, 1, g_dim), w_map),
            pl.BlockSpec((1, 3, f_dim + g_dim, s_dim), w_map),
            pl.BlockSpec((1, 3, s_dim, s_dim), w_map),
            pl.BlockSpec((1, 3, 1, s_dim), w_map),
            pl.BlockSpec((1, 3, 1, s_dim), w_map),
            pl.BlockSpec((1, f_dim, g_dim), a_map),
        ],
        out_specs=pl.BlockSpec((1, 1, batch, s_dim), x_map),
        scratch_shapes=[
            pltpu.VMEM((seq_len, batch, g_dim), jnp.float32),   # global history
            pltpu.VMEM((batch, g_dim), jnp.float32),            # last global state
            pltpu.VMEM((n_party, batch, s_dim), jnp.float32),   # per-party speaker states
        ],
        compiler_params=pltpu.CompilerParams(
            # Direction axis kept "arbitrary" for safety (state reset at t == 0 makes it
            # independent); could be "parallel" on v7x to split fwd/bwd across the 2 TCs.
            dimension_semantics=("arbitrary", "arbitrary")),
    )(feats, masks,
      rnn_p["g_wih"], rnn_p["g_whh"], rnn_p["g_bih"], rnn_p["g_bhh"],
      rnn_p["p_wih"], rnn_p["p_whh"], rnn_p["p_bih"], rnn_p["p_bhh"],
      rnn_p["attn_w"])


# ----------------------------------------------------------------------------
# Kernel 2: emotion GRU (zero hidden state -> not recurrent, hoisted out of the scan)
# ----------------------------------------------------------------------------
def _emotion_kernel(x_ref, wih_ref, bih_ref, bhh_ref, out_ref):
    # With h0 == 0: gh = 0 @ whh + bhh = bhh, so h' = (1 - z) * n.
    x = x_ref[...][0]                      # (N, S)
    wih = wih_ref[...][0]                  # (3, S, E)
    bih = bih_ref[...][0]                  # (3, 1, E)
    bhh = bhh_ref[...][0]
    gi_r = jnp.dot(x, wih[0], preferred_element_type=jnp.float32) + bih[0]
    gi_z = jnp.dot(x, wih[1], preferred_element_type=jnp.float32) + bih[1]
    gi_n = jnp.dot(x, wih[2], preferred_element_type=jnp.float32) + bih[2]
    r = jax.nn.sigmoid(gi_r + bhh[0])
    z = jax.nn.sigmoid(gi_z + bhh[1])
    n = jnp.tanh(gi_n + r * bhh[2])
    out_ref[...] = ((1.0 - z) * n)[None, :, :]


def emotion_gru(sel_flat, wih, bih, bhh):
    """sel_flat: (2, N, S) -> (2, N, E); one grid step per direction (different weights)."""
    n_dir, n_rows, s_dim = sel_flat.shape
    e_dim = wih.shape[-1]
    return pl.pallas_call(
        _emotion_kernel,
        out_shape=jax.ShapeDtypeStruct((n_dir, n_rows, e_dim), jnp.float32),
        grid=(n_dir,),
        in_specs=[
            pl.BlockSpec((1, n_rows, s_dim), lambda d: (d, 0, 0)),
            pl.BlockSpec((1, 3, s_dim, e_dim), lambda d: (d, 0, 0, 0)),
            pl.BlockSpec((1, 3, 1, e_dim), lambda d: (d, 0, 0, 0)),
            pl.BlockSpec((1, 3, 1, e_dim), lambda d: (d, 0, 0, 0)),
        ],
        out_specs=pl.BlockSpec((1, n_rows, e_dim), lambda d: (d, 0, 0)),
        compiler_params=pltpu.CompilerParams(dimension_semantics=("parallel",)),
    )(sel_flat, wih, bih, bhh)


# ----------------------------------------------------------------------------
# Kernel 3: outer self-attention + classifier head (fc1 + ReLU + fc2 + log_softmax)
# ----------------------------------------------------------------------------
def _attn_head_kernel(e_ref, wt_ref, w1_ref, b1_ref, w2_ref, b2_ref, out_ref):
    # e: (T, B, D); per batch element: softmax((e @ wt) e^T) e, then the classifier head.
    e = e_ref[...]
    wt = wt_ref[...]
    w1 = w1_ref[...]
    b1 = b1_ref[...]
    w2 = w2_ref[...]
    b2 = b2_ref[...]
    batch = e.shape[1]
    outs = []
    for b in range(batch):
        eb = e[:, b, :]                                                    # (T, D)
        q = jnp.dot(eb, wt, preferred_element_type=jnp.float32)            # (T, D)
        scores = jax.lax.dot_general(q, eb, (((1,), (1,)), ((), ())),
                                     preferred_element_type=jnp.float32)   # (T, T)
        mx = jnp.max(scores, axis=-1, keepdims=True)
        p = jnp.exp(scores - mx)
        alpha = p / jnp.sum(p, axis=-1, keepdims=True)
        att = jnp.dot(alpha, eb, preferred_element_type=jnp.float32)       # (T, D)
        h = jnp.maximum(jnp.dot(att, w1, preferred_element_type=jnp.float32) + b1, 0.0)
        logits = jnp.dot(h, w2, preferred_element_type=jnp.float32) + b2
        lmx = jnp.max(logits, axis=-1, keepdims=True)
        lse = lmx + jnp.log(jnp.sum(jnp.exp(logits - lmx), axis=-1, keepdims=True))
        outs.append((logits - lse)[:, None, :])
    out_ref[...] = jnp.concatenate(outs, axis=1)


_VMEM = pl.BlockSpec(memory_space=pltpu.MemorySpace.VMEM)


def attention_classifier(emotions, att_w, fc1_w, fc1_b, fc2_w, fc2_b):
    seq_len, batch, _ = emotions.shape
    n_cls = fc2_w.shape[1]
    return pl.pallas_call(
        _attn_head_kernel,
        out_shape=jax.ShapeDtypeStruct((seq_len, batch, n_cls), jnp.float32),
        in_specs=[_VMEM] * 6,
        out_specs=_VMEM,
    )(emotions, att_w, fc1_w, fc1_b, fc2_w, fc2_b)


# ----------------------------------------------------------------------------
# Model glue (plain JAX)
# ----------------------------------------------------------------------------
def reverse_sequence(x, utt_num):
    # x: (seq, B, D); utt_num: (B,). Assumes max(utt_num) == seq (as the torch code requires).
    seq = x.shape[0]
    s = jnp.arange(seq)[:, None]                       # (seq, 1)
    idx = utt_num[None, :] - 1 - s                     # (seq, B)
    valid = (s < utt_num[None, :]).astype(x.dtype)     # (seq, B)
    idx = jnp.clip(idx, 0, seq - 1)
    gathered = jnp.take_along_axis(x, idx[:, :, None], axis=0)
    return gathered * valid[:, :, None]


def birnn_forward(params, feature_concat, speaker_mask, utt_num):
    seq_len, batch, _ = feature_concat.shape
    rnn = params["rnn"]

    # stack forward + reversed inputs along a direction axis -> one persistent scan kernel
    rev_feat = reverse_sequence(feature_concat, utt_num)
    rev_mask = reverse_sequence(speaker_mask, utt_num)
    feats = jnp.stack([feature_concat, rev_feat], axis=0)     # (2, T, B, F)
    masks = jnp.stack([speaker_mask, rev_mask], axis=0)       # (2, T, B, P)

    sel = run_rnn_scan(rnn, feats, masks)                     # (2, T, B, S)
    s_dim = sel.shape[-1]

    emo = emotion_gru(sel.reshape(2, seq_len * batch, s_dim),
                      rnn["e_wih"], rnn["e_bih"], rnn["e_bhh"])
    e_dim = emo.shape[-1]
    emo = emo.reshape(2, seq_len, batch, e_dim)
    emo_fwd = emo[0]
    emo_bwd = reverse_sequence(emo[1], utt_num)               # flip back + zero padded tail

    emotions = jnp.concatenate([emo_bwd, emo_fwd], axis=-1)   # (T, B, 2E)

    return attention_classifier(emotions, params["att_w"],
                                params["fc1_w"], params["fc1_b"],
                                params["fc2_w"], params["fc2_b"])


# ----------------------------------------------------------------------------
# Deterministic parameter init (synthetic; torch shapes, stored transposed & per gate)
# ----------------------------------------------------------------------------
def _uniform(key, shape, bound):
    return jax.random.uniform(key, shape, jnp.float32, minval=-bound, maxval=bound)


def _init_gru_stacked(key, in_dim, h_dim):
    # (2 directions, 3 gates r/z/n, ...); weights stored transposed vs torch (In, H).
    bound = 1.0 / math.sqrt(h_dim)
    k1, k2, k3, k4 = jax.random.split(key, 4)
    return (_uniform(k1, (2, 3, in_dim, h_dim), bound),
            _uniform(k2, (2, 3, h_dim, h_dim), bound),
            _uniform(k3, (2, 3, 1, h_dim), bound),
            _uniform(k4, (2, 3, 1, h_dim), bound))


def init_model(key, f, g, s, e, h, c):
    kg, kp, ke, ka, kat, k1a, k1b, k2a, k2b = jax.random.split(key, 9)
    g_wih, g_whh, g_bih, g_bhh = _init_gru_stacked(kg, f + s, g)
    p_wih, p_whh, p_bih, p_bhh = _init_gru_stacked(kp, f + g, s)
    # emotion cell: its hidden state is always zero in the reference, so whh is irrelevant.
    e_wih, _, e_bih, e_bhh = _init_gru_stacked(ke, s, e)
    return {
        "rnn": {
            "g_wih": g_wih, "g_whh": g_whh, "g_bih": g_bih, "g_bhh": g_bhh,
            "p_wih": p_wih, "p_whh": p_whh, "p_bih": p_bih, "p_bhh": p_bhh,
            "e_wih": e_wih, "e_bih": e_bih, "e_bhh": e_bhh,
            "attn_w": _uniform(ka, (2, f, g), 1.0 / math.sqrt(f)),
        },
        "att_w": _uniform(kat, (2 * e, 2 * e), 1.0 / math.sqrt(2 * e)),
        "fc1_w": _uniform(k1a, (2 * e, 2 * h), 1.0 / math.sqrt(2 * e)),
        "fc1_b": _uniform(k1b, (1, 2 * h), 1.0 / math.sqrt(2 * e)),
        "fc2_w": _uniform(k2a, (2 * h, c), 1.0 / math.sqrt(2 * h)),
        "fc2_b": _uniform(k2b, (1, c), 1.0 / math.sqrt(2 * h)),
    }


# ----------------------------------------------------------------------------
if __name__ == "__main__":
    F, G, S, E, H, C, P = 16, 12, 10, 8, 16, 6, 2
    SEQ, B = 8, 2

    key = jax.random.PRNGKey(0)
    kparam, kfeat, kmask = jax.random.split(key, 3)

    params = init_model(kparam, F, G, S, E, H, C)
    feature_concat = jax.random.normal(kfeat, (SEQ, B, F), jnp.float32)
    spk_id = jax.random.randint(kmask, (SEQ, B), 0, P)
    speaker_mask = jax.nn.one_hot(spk_id, P, dtype=jnp.float32)
    utt_num = jnp.array([SEQ, SEQ - 2], dtype=jnp.int32)   # max(utt_num) == SEQ

    fwd = jax.jit(birnn_forward)
    out = fwd(params, feature_concat, speaker_mask, utt_num)
    jax.block_until_ready(out)
    assert out.shape == (SEQ, B, C), out.shape
    assert bool(jnp.all(jnp.isfinite(out)))
    print("KERNEL_OK")
</pallas_src>

<mosaic_0001>
module attributes {stable_mosaic.version = 11 : i64} {
  func.func @_emotion_kernel(%arg0: i32, %arg1: memref<1x16x10xf32, #tpu.memory_space<vmem>>, %arg2: memref<1x3x10x8xf32, #tpu.memory_space<vmem>>, %arg3: memref<1x3x1x8xf32, #tpu.memory_space<vmem>>, %arg4: memref<1x3x1x8xf32, #tpu.memory_space<vmem>>, %arg5: memref<1x16x8xf32, #tpu.memory_space<vmem>>) attributes {dimension_semantics = [#tpu.dimension_semantics<parallel>], iteration_bounds = array<i64: 2>, scalar_prefetch = 0 : i64, scratch_operands = 0 : i64, tpu.core_type = #tpu.core_type<tc>, window_params = [{transform_indices = @transform_0, window_bounds = array<i64: 1, 16, 10>}, {transform_indices = @transform_1, window_bounds = array<i64: 1, 3, 10, 8>}, {transform_indices = @transform_2, window_bounds = array<i64: 1, 3, 1, 8>}, {transform_indices = @transform_3, window_bounds = array<i64: 1, 3, 1, 8>}, {transform_indices = @transform_4, window_bounds = array<i64: 1, 16, 8>}]} {
    %c0 = arith.constant 0 : index
    %c0_0 = arith.constant 0 : index
    %c0_1 = arith.constant 0 : index
    %0 = vector.load %arg1[%c0, %c0_0, %c0_1] : memref<1x16x10xf32, #tpu.memory_space<vmem>>, vector<1x16x10xf32>
    %1 = vector.shape_cast %0 : vector<1x16x10xf32> to vector<16x10xf32>
    %c0_2 = arith.constant 0 : index
    %c0_3 = arith.constant 0 : index
    %c0_4 = arith.constant 0 : index
    %c0_5 = arith.constant 0 : index
    %2 = vector.load %arg2[%c0_2, %c0_3, %c0_4, %c0_5] : memref<1x3x10x8xf32, #tpu.memory_space<vmem>>, vector<1x3x10x8xf32>
    %3 = vector.shape_cast %2 : vector<1x3x10x8xf32> to vector<3x10x8xf32>
    %c0_6 = arith.constant 0 : index
    %c0_7 = arith.constant 0 : index
    %c0_8 = arith.constant 0 : index
    %c0_9 = arith.constant 0 : index
    %4 = vector.load %arg3[%c0_6, %c0_7, %c0_8, %c0_9] : memref<1x3x1x8xf32, #tpu.memory_space<vmem>>, vector<1x3x1x8xf32>
    %5 = vector.shape_cast %4 : vector<1x3x1x8xf32> to vector<3x1x8xf32>
    %c0_10 = arith.constant 0 : index
    %c0_11 = arith.constant 0 : index
    %c0_12 = arith.constant 0 : index
    %c0_13 = arith.constant 0 : index
    %6 = vector.load %arg4[%c0_10, %c0_11, %c0_12, %c0_13] : memref<1x3x1x8xf32, #tpu.memory_space<vmem>>, vector<1x3x1x8xf32>
    %7 = vector.shape_cast %6 : vector<1x3x1x8xf32> to vector<3x1x8xf32>
    %8 = vector.extract_strided_slice %3 {offsets = [0, 0, 0], sizes = [1, 10, 8], strides = [1, 1, 1]} : vector<3x10x8xf32> to vector<1x10x8xf32>
    %9 = vector.shape_cast %8 : vector<1x10x8xf32> to vector<10x8xf32>
    %cst = arith.constant dense<0.000000e+00> : vector<16x8xf32>
    %10 = tpu.matmul %1, %9, %cst {dimension_numbers = #tpu.dot_dimension_numbers<[1], [0], [0], [1], [0, 0, 1, 1], [], []>} : vector<16x10xf32>, vector<10x8xf32>, vector<16x8xf32> -> vector<16x8xf32>
    %11 = vector.extract_strided_slice %5 {offsets = [0, 0, 0], sizes = [1, 1, 8], strides = [1, 1, 1]} : vector<3x1x8xf32> to vector<1x1x8xf32>
    %12 = vector.shape_cast %11 : vector<1x1x8xf32> to vector<1x8xf32>
    %13 = vector.broadcast %12 : vector<1x8xf32> to vector<16x8xf32>
    %14 = arith.addf %10, %13 : vector<16x8xf32>
    %15 = vector.extract_strided_slice %3 {offsets = [1, 0, 0], sizes = [1, 10, 8], strides = [1, 1, 1]} : vector<3x10x8xf32> to vector<1x10x8xf32>
    %16 = vector.shape_cast %15 : vector<1x10x8xf32> to vector<10x8xf32>
    %cst_14 = arith.constant dense<0.000000e+00> : vector<16x8xf32>
    %17 = tpu.matmul %1, %16, %cst_14 {dimension_numbers = #tpu.dot_dimension_numbers<[1], [0], [0], [1], [0, 0, 1, 1], [], []>} : vector<16x10xf32>, vector<10x8xf32>, vector<16x8xf32> -> vector<16x8xf32>
    %18 = vector.extract_strided_slice %5 {offsets = [1, 0, 0], sizes = [1, 1, 8], strides = [1, 1, 1]} : vector<3x1x8xf32> to vector<1x1x8xf32>
    %19 = vector.shape_cast %18 : vector<1x1x8xf32> to vector<1x8xf32>
    %20 = vector.broadcast %19 : vector<1x8xf32> to vector<16x8xf32>
    %21 = arith.addf %17, %20 : vector<16x8xf32>
    %22 = vector.extract_strided_slice %3 {offsets = [2, 0, 0], sizes = [1, 10, 8], strides = [1, 1, 1]} : vector<3x10x8xf32> to vector<1x10x8xf32>
    %23 = vector.shape_cast %22 : vector<1x10x8xf32> to vector<10x8xf32>
    %cst_15 = arith.constant dense<0.000000e+00> : vector<16x8xf32>
    %24 = tpu.matmul %1, %23, %cst_15 {dimension_numbers = #tpu.dot_dimension_numbers<[1], [0], [0], [1], [0, 0, 1, 1], [], []>} : vector<16x10xf32>, vector<10x8xf32>, vector<16x8xf32> -> vector<16x8xf32>
    %25 = vector.extract_strided_slice %5 {offsets = [2, 0, 0], sizes = [1, 1, 8], strides = [1, 1, 1]} : vector<3x1x8xf32> to vector<1x1x8xf32>
    %26 = vector.shape_cast %25 : vector<1x1x8xf32> to vector<1x8xf32>
    %27 = vector.broadcast %26 : vector<1x8xf32> to vector<16x8xf32>
    %28 = arith.addf %24, %27 : vector<16x8xf32>
    %29 = vector.extract_strided_slice %7 {offsets = [0, 0, 0], sizes = [1, 1, 8], strides = [1, 1, 1]} : vector<3x1x8xf32> to vector<1x1x8xf32>
    %30 = vector.shape_cast %29 : vector<1x1x8xf32> to vector<1x8xf32>
    %31 = vector.broadcast %30 : vector<1x8xf32> to vector<16x8xf32>
    %32 = arith.addf %14, %31 : vector<16x8xf32>
    %33 = arith.negf %32 : vector<16x8xf32>
    %34 = math.exp %33 : vector<16x8xf32>
    %cst_16 = arith.constant 1.000000e+00 : f32
    %35 = vector.broadcast %cst_16 : f32 to vector<16x8xf32>
    %36 = arith.addf %35, %34 : vector<16x8xf32>
    %37 = arith.divf %35, %36 : vector<16x8xf32>
    %38 = vector.extract_strided_slice %7 {offsets = [1, 0, 0], sizes = [1, 1, 8], strides = [1, 1, 1]} : vector<3x1x8xf32> to vector<1x1x8xf32>
    %39 = vector.shape_cast %38 : vector<1x1x8xf32> to vector<1x8xf32>
    %40 = vector.broadcast %39 : vector<1x8xf32> to vector<16x8xf32>
    %41 = arith.addf %21, %40 : vector<16x8xf32>
    %42 = arith.negf %41 : vector<16x8xf32>
    %43 = math.exp %42 : vector<16x8xf32>
    %cst_17 = arith.constant 1.000000e+00 : f32
    %44 = vector.broadcast %cst_17 : f32 to vector<16x8xf32>
    %45 = arith.addf %44, %43 : vector<16x8xf32>
    %46 = arith.divf %44, %45 : vector<16x8xf32>
    %47 = vector.extract_strided_slice %7 {offsets = [2, 0, 0], sizes = [1, 1, 8], strides = [1, 1, 1]} : vector<3x1x8xf32> to vector<1x1x8xf32>
    %48 = vector.shape_cast %47 : vector<1x1x8xf32> to vector<1x8xf32>
    %49 = vector.broadcast %48 : vector<1x8xf32> to vector<16x8xf32>
    %50 = arith.mulf %37, %49 : vector<16x8xf32>
    %51 = arith.addf %28, %50 : vector<16x8xf32>
    %52 = math.tanh %51 : vector<16x8xf32>
    %cst_18 = arith.constant 1.000000e+00 : f32
    %53 = vector.broadcast %cst_18 : f32 to vector<16x8xf32>
    %54 = arith.subf %53, %46 : vector<16x8xf32>
    %55 = arith.mulf %54, %52 : vector<16x8xf32>
    %56 = vector.shape_cast %55 : vector<16x8xf32> to vector<1x16x8xf32>
    %c0_19 = arith.constant 0 : index
    %c0_20 = arith.constant 0 : index
    %c0_21 = arith.constant 0 : index
    %57 = vector.load %arg5[%c0_19, %c0_20, %c0_21] : memref<1x16x8xf32, #tpu.memory_space<vmem>>, vector<1x16x8xf32>
    tpu.vector_store %arg5[%c0_19, %c0_20, %c0_21], %56 {strides = array<i32>} : memref<1x16x8xf32, #tpu.memory_space<vmem>>, vector<1x16x8xf32>,
    return
  }
  func.func @transform_0(%arg0: i32) -> (i32, i32, i32) {
    %c0_i32 = arith.constant 0 : i32
    %c0_i32_0 = arith.constant 0 : i32
    %c0_i32_1 = arith.constant 0 : i32
    return %arg0, %c0_i32, %c0_i32_0 : i32, i32, i32
  }
  func.func @transform_1(%arg0: i32) -> (i32, i32, i32, i32) {
    %c0_i32 = arith.constant 0 : i32
    %c0_i32_0 = arith.constant 0 : i32
    %c0_i32_1 = arith.constant 0 : i32
    %c0_i32_2 = arith.constant 0 : i32
    return %arg0, %c0_i32, %c0_i32_0, %c0_i32_1 : i32, i32, i32, i32
  }
  func.func @transform_2(%arg0: i32) -> (i32, i32, i32, i32) {
    %c0_i32 = arith.constant 0 : i32
    %c0_i32_0 = arith.constant 0 : i32
    %c0_i32_1 = arith.constant 0 : i32
    %c0_i32_2 = arith.constant 0 : i32
    return %arg0, %c0_i32, %c0_i32_0, %c0_i32_1 : i32, i32, i32, i32
  }
  func.func @transform_3(%arg0: i32) -> (i32, i32, i32, i32) {
    %c0_i32 = arith.constant 0 : i32
    %c0_i32_0 = arith.constant 0 : i32
    %c0_i32_1 = arith.constant 0 : i32
    %c0_i32_2 = arith.constant 0 : i32
    return %arg0, %c0_i32, %c0_i32_0, %c0_i32_1 : i32, i32, i32, i32
  }
  func.func @transform_4(%arg0: i32) -> (i32, i32, i32) {
    %c0_i32 = arith.constant 0 : i32
    %c0_i32_0 = arith.constant 0 : i32
    %c0_i32_1 = arith.constant 0 : i32
    return %arg0, %c0_i32, %c0_i32_0 : i32, i32, i32
  }
}

module attributes {stable_mosaic.version = 11 : i64} {
  func.func @_rnn_scan_kernel(%arg0: i32, %arg1: i32, %arg2: memref<1x1x2x16xf32, #tpu.memory_space<vmem>>, %arg3: memref<1x1x2x2xf32, #tpu.memory_space<vmem>>, %arg4: memref<1x3x26x12xf32, #tpu.memory_space<vmem>>, %arg5: memref<1x3x12x12xf32, #tpu.memory_space<vmem>>, %arg6: memref<1x3x1x12xf32, #tpu.memory_space<vmem>>, %arg7: memref<1x3x1x12xf32, #tpu.memory_space<vmem>>, %arg8: memref<1x3x28x10xf32, #tpu.memory_space<vmem>>, %arg9: memref<1x3x10x10xf32, #tpu.memory_space<vmem>>, %arg10: memref<1x3x1x10xf32, #tpu.memory_space<vmem>>, %arg11: memref<1x3x1x10xf32, #tpu.memory_space<vmem>>, %arg12: memref<1x16x12xf32, #tpu.memory_space<vmem>>, %arg13: memref<1x1x2x10xf32, #tpu.memory_space<vmem>>, %arg14: memref<8x2x12xf32, #tpu.memory_space<vmem>>, %arg15: memref<2x12xf32, #tpu.memory_space<vmem>>, %arg16: memref<2x2x10xf32, #tpu.memory_space<vmem>>) attributes {dimension_semantics = [#tpu.dimension_semantics<arbitrary>, #tpu.dimension_semantics<arbitrary>], iteration_bounds = array<i64: 2, 8>, scalar_prefetch = 0 : i64, scratch_operands = 3 : i64, tpu.core_type = #tpu.core_type<tc>, window_params = [{transform_indices = @transform_0, window_bounds = array<i64: 1, 1, 2, 16>}, {transform_indices = @transform_1, window_bounds = array<i64: 1, 1, 2, 2>}, {transform_indices = @transform_2, window_bounds = array<i64: 1, 3, 26, 12>}, {transform_indices = @transform_3, window_bounds = array<i64: 1, 3, 12, 12>}, {transform_indices = @transform_4, window_bounds = array<i64: 1, 3, 1, 12>}, {transform_indices = @transform_5, window_bounds = array<i64: 1, 3, 1, 12>}, {transform_indices = @transform_6, window_bounds = array<i64: 1, 3, 28, 10>}, {transform_indices = @transform_7, window_bounds = array<i64: 1, 3, 10, 10>}, {transform_indices = @transform_8, window_bounds = array<i64: 1, 3, 1, 10>}, {transform_indices = @transform_9, window_bounds = array<i64: 1, 3, 1, 10>}, {transform_indices = @transform_10, window_bounds = array<i64: 1, 16, 12>}, {transform_indices = @transform_11, window_bounds = array<i64: 1, 1, 2, 10>}]} {
    %c0_i32 = arith.constant 0 : i32
    %0 = arith.cmpi eq, %arg1, %c0_i32 : i32
    %1 = arith.extui %0 : i1 to i32
    %c0_i32_0 = arith.constant 0 : i32
    %2 = arith.cmpi ne, %1, %c0_i32_0 : i32
    scf.if %2 {
      %cst_99 = arith.constant 0.000000e+00 : f32
      %274 = vector.broadcast %cst_99 : f32 to vector<8x2x12xf32>
      %c0_100 = arith.constant 0 : index
      %c0_101 = arith.constant 0 : index
      %c0_102 = arith.constant 0 : index
      %275 = vector.load %arg14[%c0_100, %c0_101, %c0_102] : memref<8x2x12xf32, #tpu.memory_space<vmem>>, vector<8x2x12xf32>
      tpu.vector_store %arg14[%c0_100, %c0_101, %c0_102], %274 {strides = array<i32>} : memref<8x2x12xf32, #tpu.memory_space<vmem>>, vector<8x2x12xf32>,
      %cst_103 = arith.constant 0.000000e+00 : f32
      %276 = vector.broadcast %cst_103 : f32 to vector<2x12xf32>
      %c0_104 = arith.constant 0 : index
      %c0_105 = arith.constant 0 : index
      %277 = vector.load %arg15[%c0_104, %c0_105] : memref<2x12xf32, #tpu.memory_space<vmem>>, vector<2x12xf32>
      tpu.vector_store %arg15[%c0_104, %c0_105], %276 {strides = array<i32>} : memref<2x12xf32, #tpu.memory_space<vmem>>, vector<2x12xf32>,
      %cst_106 = arith.constant 0.000000e+00 : f32
      %278 = vector.broadcast %cst_106 : f32 to vector<2x2x10xf32>
      %c0_107 = arith.constant 0 : index
      %c0_108 = arith.constant 0 : index
      %c0_109 = arith.constant 0 : index
      %279 = vector.load %arg16[%c0_107, %c0_108, %c0_109] : memref<2x2x10xf32, #tpu.memory_space<vmem>>, vector<2x2x10xf32>
      tpu.vector_store %arg16[%c0_107, %c0_108, %c0_109], %278 {strides = array<i32>} : memref<2x2x10xf32, #tpu.memory_space<vmem>>, vector<2x2x10xf32>,
    } else {
    }
    %c0 = arith.constant 0 : index
    %c0_1 = arith.constant 0 : index
    %c0_2 = arith.constant 0 : index
    %c0_3 = arith.constant 0 : index
    %3 = vector.load %arg2[%c0, %c0_1, %c0_2, %c0_3] : memref<1x1x2x16xf32, #tpu.memory_space<vmem>>, vector<1x1x2x16xf32>
    %4 = vector.shape_cast %3 : vector<1x1x2x16xf32> to vector<2x16xf32>
    %c0_4 = arith.constant 0 : index
    %c0_5 = arith.constant 0 : index
    %c0_6 = arith.constant 0 : index
    %c0_7 = arith.constant 0 : index
    %5 = vector.load %arg3[%c0_4, %c0_5, %c0_6, %c0_7] : memref<1x1x2x2xf32, #tpu.memory_space<vmem>>, vector<1x1x2x2xf32>
    %6 = vector.shape_cast %5 : vector<1x1x2x2xf32> to vector<2x2xf32>
    %c0_8 = arith.constant 0 : index
    %c0_9 = arith.constant 0 : index
    %7 = vector.load %arg15[%c0_8, %c0_9] : memref<2x12xf32, #tpu.memory_space<vmem>>, vector<2x12xf32>
    %c0_10 = arith.constant 0 : index
    %c0_11 = arith.constant 0 : index
    %c0_12 = arith.constant 0 : index
    %8 = vector.load %arg16[%c0_10, %c0_11, %c0_12] : memref<2x2x10xf32, #tpu.memory_space<vmem>>, vector<2x2x10xf32>
    %c0_13 = arith.constant 0 : index
    %c0_14 = arith.constant 0 : index
    %c0_15 = arith.constant 0 : index
    %9 = vector.load %arg14[%c0_13, %c0_14, %c0_15] : memref<8x2x12xf32, #tpu.memory_space<vmem>>, vector<8x2x12xf32>
    %c0_16 = arith.constant 0 : index
    %c0_17 = arith.constant 0 : index
    %c0_18 = arith.constant 0 : index
    %c0_19 = arith.constant 0 : index
    %10 = vector.load %arg4[%c0_16, %c0_17, %c0_18, %c0_19] : memref<1x3x26x12xf32, #tpu.memory_space<vmem>>, vector<1x3x26x12xf32>
    %11 = vector.shape_cast %10 : vector<1x3x26x12xf32> to vector<3x26x12xf32>
    %c0_20 = arith.constant 0 : index
    %c0_21 = arith.constant 0 : index
    %c0_22 = arith.constant 0 : index
    %c0_23 = arith.constant 0 : index
    %12 = vector.load %arg5[%c0_20, %c0_21, %c0_22, %c0_23] : memref<1x3x12x12xf32, #tpu.memory_space<vmem>>, vector<1x3x12x12xf32>
    %13 = vector.shape_cast %12 : vector<1x3x12x12xf32> to vector<3x12x12xf32>
    %c0_24 = arith.constant 0 : index
    %c0_25 = arith.constant 0 : index
    %c0_26 = arith.constant 0 : index
    %c0_27 = arith.constant 0 : index
    %14 = vector.load %arg6[%c0_24, %c0_25, %c0_26, %c0_27] : memref<1x3x1x12xf32, #tpu.memory_space<vmem>>, vector<1x3x1x12xf32>
    %15 = vector.shape_cast %14 : vector<1x3x1x12xf32> to vector<3x1x12xf32>
    %c0_28 = arith.constant 0 : index
    %c0_29 = arith.constant 0 : index
    %c0_30 = arith.constant 0 : index
    %c0_31 = arith.constant 0 : index
    %16 = vector.load %arg7[%c0_28, %c0_29, %c0_30, %c0_31] : memref<1x3x1x12xf32, #tpu.memory_space<vmem>>, vector<1x3x1x12xf32>
    %17 = vector.shape_cast %16 : vector<1x3x1x12xf32> to vector<3x1x12xf32>
    %c0_32 = arith.constant 0 : index
    %c0_33 = arith.constant 0 : index
    %c0_34 = arith.constant 0 : index
    %c0_35 = arith.constant 0 : index
    %18 = vector.load %arg8[%c0_32, %c0_33, %c0_34, %c0_35] : memref<1x3x28x10xf32, #tpu.memory_space<vmem>>, vector<1x3x28x10xf32>
    %19 = vector.shape_cast %18 : vector<1x3x28x10xf32> to vector<3x28x10xf32>
    %c0_36 = arith.constant 0 : index
    %c0_37 = arith.constant 0 : index
    %c0_38 = arith.constant 0 : index
    %c0_39 = arith.constant 0 : index
    %20 = vector.load %arg9[%c0_36, %c0_37, %c0_38, %c0_39] : memref<1x3x10x10xf32, #tpu.memory_space<vmem>>, vector<1x3x10x10xf32>
    %21 = vector.shape_cast %20 : vector<1x3x10x10xf32> to vector<3x10x10xf32>
    %c0_40 = arith.constant 0 : index
    %c0_41 = arith.constant 0 : index
    %c0_42 = arith.constant 0 : index
    %c0_43 = arith.constant 0 : index
    %22 = vector.load %arg10[%c0_40, %c0_41, %c0_42, %c0_43] : memref<1x3x1x10xf32, #tpu.memory_space<vmem>>, vector<1x3x1x10xf32>
    %23 = vector.shape_cast %22 : vector<1x3x1x10xf32> to vector<3x1x10xf32>
    %c0_44 = arith.constant 0 : index
    %c0_45 = arith.constant 0 : index
    %c0_46 = arith.constant 0 : index
    %c0_47 = arith.constant 0 : index
    %24 = vector.load %arg11[%c0_44, %c0_45, %c0_46, %c0_47] : memref<1x3x1x10xf32, #tpu.memory_space<vmem>>, vector<1x3x1x10xf32>
    %25 = vector.shape_cast %24 : vector<1x3x1x10xf32> to vector<3x1x10xf32>
    %c0_48 = arith.constant 0 : index
    %c0_49 = arith.constant 0 : index
    %c0_50 = arith.constant 0 : index
    %26 = vector.load %arg12[%c0_48, %c0_49, %c0_50] : memref<1x16x12xf32, #tpu.memory_space<vmem>>, vector<1x16x12xf32>
    %27 = vector.shape_cast %26 : vector<1x16x12xf32> to vector<16x12xf32>
    %cst = arith.constant 0.000000e+00 : f32
    %28 = vector.broadcast %cst : f32 to vector<2x10xf32>
    %29 = vector.extract_strided_slice %6 {offsets = [0, 0], sizes = [2, 1], strides = [1, 1]} : vector<2x2xf32> to vector<2x1xf32>
    %30 = vector.extract_strided_slice %8 {offsets = [0, 0, 0], sizes = [1, 2, 10], strides = [1, 1, 1]} : vector<2x2x10xf32> to vector<1x2x10xf32>
    %31 = vector.shape_cast %30 : vector<1x2x10xf32> to vector<2x10xf32>
    %32 = vector.broadcast %29 : vector<2x1xf32> to vector<2x10xf32>
    %33 = arith.mulf %32, %31 : vector<2x10xf32>
    %34 = arith.addf %28, %33 : vector<2x10xf32>
    %35 = vector.extract_strided_slice %6 {offsets = [0, 1], sizes = [2, 1], strides = [1, 1]} : vector<2x2xf32> to vector<2x1xf32>
    %36 = vector.extract_strided_slice %8 {offsets = [1, 0, 0], sizes = [1, 2, 10], strides = [1, 1, 1]} : vector<2x2x10xf32> to vector<1x2x10xf32>
    %37 = vector.shape_cast %36 : vector<1x2x10xf32> to vector<2x10xf32>
    %38 = vector.broadcast %35 : vector<2x1xf32> to vector<2x10xf32>
    %39 = arith.mulf %38, %37 : vector<2x10xf32>
    %40 = arith.addf %34, %39 : vector<2x10xf32>
    %41 = tpu.concatenate %4, %40 in 1 : vector<2x16xf32>, vector<2x10xf32> -> vector<2x26xf32>
    %42 = vector.extract_strided_slice %11 {offsets = [0, 0, 0], sizes = [1, 26, 12], strides = [1, 1, 1]} : vector<3x26x12xf32> to vector<1x26x12xf32>
    %43 = vector.shape_cast %42 : vector<1x26x12xf32> to vector<26x12xf32>
    %cst_51 = arith.constant dense<0.000000e+00> : vector<2x12xf32>
    %44 = tpu.matmul %41, %43, %cst_51 {dimension_numbers = #tpu.dot_dimension_numbers<[1], [0], [0], [1], [0, 0, 1, 1], [], []>} : vector<2x26xf32>, vector<26x12xf32>, vector<2x12xf32> -> vector<2x12xf32>
    %45 = vector.extract_strided_slice %15 {offsets = [0, 0, 0], sizes = [1, 1, 12], strides = [1, 1, 1]} : vector<3x1x12xf32> to vector<1x1x12xf32>
    %46 = vector.shape_cast %45 : vector<1x1x12xf32> to vector<1x12xf32>
    %47 = vector.broadcast %46 : vector<1x12xf32> to vector<2x12xf32>
    %48 = arith.addf %44, %47 : vector<2x12xf32>
    %49 = vector.extract_strided_slice %11 {offsets = [1, 0, 0], sizes = [1, 26, 12], strides = [1, 1, 1]} : vector<3x26x12xf32> to vector<1x26x12xf32>
    %50 = vector.shape_cast %49 : vector<1x26x12xf32> to vector<26x12xf32>
    %cst_52 = arith.constant dense<0.000000e+00> : vector<2x12xf32>
    %51 = tpu.matmul %41, %50, %cst_52 {dimension_numbers = #tpu.dot_dimension_numbers<[1], [0], [0], [1], [0, 0, 1, 1], [], []>} : vector<2x26xf32>, vector<26x12xf32>, vector<2x12xf32> -> vector<2x12xf32>
    %52 = vector.extract_strided_slice %15 {offsets = [1, 0, 0], sizes = [1, 1, 12], strides = [1, 1, 1]} : vector<3x1x12xf32> to vector<1x1x12xf32>
    %53 = vector.shape_cast %52 : vector<1x1x12xf32> to vector<1x12xf32>
    %54 = vector.broadcast %53 : vector<1x12xf32> to vector<2x12xf32>
    %55 = arith.addf %51, %54 : vector<2x12xf32>
    %56 = vector.extract_strided_slice %11 {offsets = [2, 0, 0], sizes = [1, 26, 12], strides = [1, 1, 1]} : vector<3x26x12xf32> to vector<1x26x12xf32>
    %57 = vector.shape_cast %56 : vector<1x26x12xf32> to vector<26x12xf32>
    %cst_53 = arith.constant dense<0.000000e+00> : vector<2x12xf32>
    %58 = tpu.matmul %41, %57, %cst_53 {dimension_numbers = #tpu.dot_dimension_numbers<[1], [0], [0], [1], [0, 0, 1, 1], [], []>} : vector<2x26xf32>, vector<26x12xf32>, vector<2x12xf32> -> vector<2x12xf32>
    %59 = vector.extract_strided_slice %15 {offsets = [2, 0, 0], sizes = [1, 1, 12], strides = [1, 1, 1]} : vector<3x1x12xf32> to vector<1x1x12xf32>
    %60 = vector.shape_cast %59 : vector<1x1x12xf32> to vector<1x12xf32>
    %61 = vector.broadcast %60 : vector<1x12xf32> to vector<2x12xf32>
    %62 = arith.addf %58, %61 : vector<2x12xf32>
    %63 = vector.extract_strided_slice %13 {offsets = [0, 0, 0], sizes = [1, 12, 12], strides = [1, 1, 1]} : vector<3x12x12xf32> to vector<1x12x12xf32>
    %64 = vector.shape_cast %63 : vector<1x12x12xf32> to vector<12x12xf32>
    %cst_54 = arith.constant dense<0.000000e+00> : vector<2x12xf32>
    %65 = tpu.matmul %7, %64, %cst_54 {dimension_numbers = #tpu.dot_dimension_numbers<[1], [0], [0], [1], [0, 0, 1, 1], [], []>} : vector<2x12xf32>, vector<12x12xf32>, vector<2x12xf32> -> vector<2x12xf32>
    %66 = vector.extract_strided_slice %17 {offsets = [0, 0, 0], sizes = [1, 1, 12], strides = [1, 1, 1]} : vector<3x1x12xf32> to vector<1x1x12xf32>
    %67 = vector.shape_cast %66 : vector<1x1x12xf32> to vector<1x12xf32>
    %68 = vector.broadcast %67 : vector<1x12xf32> to vector<2x12xf32>
    %69 = arith.addf %65, %68 : vector<2x12xf32>
    %70 = vector.extract_strided_slice %13 {offsets = [1, 0, 0], sizes = [1, 12, 12], strides = [1, 1, 1]} : vector<3x12x12xf32> to vector<1x12x12xf32>
    %71 = vector.shape_cast %70 : vector<1x12x12xf32> to vector<12x12xf32>
    %cst_55 = arith.constant dense<0.000000e+00> : vector<2x12xf32>
    %72 = tpu.matmul %7, %71, %cst_55 {dimension_numbers = #tpu.dot_dimension_numbers<[1], [0], [0], [1], [0, 0, 1, 1], [], []>} : vector<2x12xf32>, vector<12x12xf32>, vector<2x12xf32> -> vector<2x12xf32>
    %73 = vector.extract_strided_slice %17 {offsets = [1, 0, 0], sizes = [1, 1, 12], strides = [1, 1, 1]} : vector<3x1x12xf32> to vector<1x1x12xf32>
    %74 = vector.shape_cast %73 : vector<1x1x12xf32> to vector<1x12xf32>
    %75 = vector.broadcast %74 : vector<1x12xf32> to vector<2x12xf32>
    %76 = arith.addf %72, %75 : vector<2x12xf32>
    %77 = vector.extract_strided_slice %13 {offsets = [2, 0, 0], sizes = [1, 12, 12], strides = [1, 1, 1]} : vector<3x12x12xf32> to vector<1x12x12xf32>
    %78 = vector.shape_cast %77 : vector<1x12x12xf32> to vector<12x12xf32>
    %cst_56 = arith.constant dense<0.000000e+00> : vector<2x12xf32>
    %79 = tpu.matmul %7, %78, %cst_56 {dimension_numbers = #tpu.dot_dimension_numbers<[1], [0], [0], [1], [0, 0, 1, 1], [], []>} : vector<2x12xf32>, vector<12x12xf32>, vector<2x12xf32> -> vector<2x12xf32>
    %80 = vector.extract_strided_slice %17 {offsets = [2, 0, 0], sizes = [1, 1, 12], strides = [1, 1, 1]} : vector<3x1x12xf32> to vector<1x1x12xf32>
    %81 = vector.shape_cast %80 : vector<1x1x12xf32> to vector<1x12xf32>
    %82 = vector.broadcast %81 : vector<1x12xf32> to vector<2x12xf32>
    %83 = arith.addf %79, %82 : vector<2x12xf32>
    %84 = arith.addf %48, %69 : vector<2x12xf32>
    %85 = arith.negf %84 : vector<2x12xf32>
    %86 = math.exp %85 : vector<2x12xf32>
    %cst_57 = arith.constant 1.000000e+00 : f32
    %87 = vector.broadcast %cst_57 : f32 to vector<2x12xf32>
    %88 = arith.addf %87, %86 : vector<2x12xf32>
    %89 = arith.divf %87, %88 : vector<2x12xf32>
    %90 = arith.addf %55, %76 : vector<2x12xf32>
    %91 = arith.negf %90 : vector<2x12xf32>
    %92 = math.exp %91 : vector<2x12xf32>
    %cst_58 = arith.constant 1.000000e+00 : f32
    %93 = vector.broadcast %cst_58 : f32 to vector<2x12xf32>
    %94 = arith.addf %93, %92 : vector<2x12xf32>
    %95 = arith.divf %93, %94 : vector<2x12xf32>
    %96 = arith.mulf %89, %83 : vector<2x12xf32>
    %97 = arith.addf %62, %96 : vector<2x12xf32>
    %98 = math.tanh %97 : vector<2x12xf32>
    %cst_59 = arith.constant 1.000000e+00 : f32
    %99 = vector.broadcast %cst_59 : f32 to vector<2x12xf32>
    %100 = arith.subf %99, %95 : vector<2x12xf32>
    %101 = arith.mulf %100, %98 : vector<2x12xf32>
    %102 = arith.mulf %95, %7 : vector<2x12xf32>
    %103 = arith.addf %101, %102 : vector<2x12xf32>
    %cst_60 = arith.constant dense<0.000000e+00> : vector<2x12xf32>
    %104 = tpu.matmul %4, %27, %cst_60 {dimension_numbers = #tpu.dot_dimension_numbers<[1], [0], [0], [1], [0, 0, 1, 1], [], []>} : vector<2x16xf32>, vector<16x12xf32>, vector<2x12xf32> -> vector<2x12xf32>
    %105 = vector.shape_cast %104 : vector<2x12xf32> to vector<1x2x12xf32>
    %106 = vector.broadcast %105 : vector<1x2x12xf32> to vector<8x2x12xf32>
    %107 = arith.mulf %9, %106 : vector<8x2x12xf32>
    %cst_61 = arith.constant dense<0.000000e+00> : vector<8x2xf32>
    %108 = vector.multi_reduction <add>, %107, %cst_61 [2] : vector<8x2x12xf32> to vector<8x2xf32>
    %109 = tpu.iota {dimensions = array<i32: 0>} : vector<8x2xi32>
    %110 = vector.broadcast %arg1 : i32 to vector<8x2xi32>
    %111 = arith.cmpi slt, %109, %110 : vector<8x2xi32>
    %cst_62 = arith.constant -1.000000e+30 : f32
    %112 = vector.broadcast %cst_62 : f32 to vector<8x2xf32>
    %113 = arith.select %111, %108, %112 : vector<8x2xi1>, vector<8x2xf32>
    %cst_63 = arith.constant dense<0xFF800000> : vector<2xf32>
    %114 = vector.multi_reduction <maximumf>, %113, %cst_63 [0] : vector<8x2xf32> to vector<2xf32>
    %115 = vector.shape_cast %114 : vector<2xf32> to vector<1x2xf32>
    %116 = vector.broadcast %115 : vector<1x2xf32> to vector<8x2xf32>
    %117 = arith.subf %113, %116 : vector<8x2xf32>
    %118 = math.exp %117 : vector<8x2xf32>
    %cst_64 = arith.constant dense<0.000000e+00> : vector<2xf32>
    %119 = vector.multi_reduction <add>, %118, %cst_64 [0] : vector<8x2xf32> to vector<2xf32>
    %120 = vector.shape_cast %119 : vector<2xf32> to vector<1x2xf32>
    %121 = vector.broadcast %120 : vector<1x2xf32> to vector<8x2xf32>
    %122 = arith.divf %118, %121 : vector<8x2xf32>
    %123 = vector.shape_cast %122 : vector<8x2xf32> to vector<8x2x1xf32>
    %124 = vector.broadcast %123 : vector<8x2x1xf32> to vector<8x2x12xf32>
    %125 = arith.mulf %124, %9 : vector<8x2x12xf32>
    %cst_65 = arith.constant dense<0.000000e+00> : vector<2x12xf32>
    %126 = vector.multi_reduction <add>, %125, %cst_65 [0] : vector<8x2x12xf32> to vector<2x12xf32>
    %c0_i32_66 = arith.constant 0 : i32
    %127 = arith.cmpi sgt, %arg1, %c0_i32_66 : i32
    %cst_67 = arith.constant 0.000000e+00 : f32
    %128 = vector.broadcast %cst_67 : f32 to vector<2x12xf32>
    %129 = arith.select %127, %126, %128 : vector<2x12xf32>
    %130 = tpu.concatenate %4, %129 in 1 : vector<2x16xf32>, vector<2x12xf32> -> vector<2x28xf32>
    %131 = vector.extract_strided_slice %19 {offsets = [0, 0, 0], sizes = [1, 28, 10], strides = [1, 1, 1]} : vector<3x28x10xf32> to vector<1x28x10xf32>
    %132 = vector.shape_cast %131 : vector<1x28x10xf32> to vector<28x10xf32>
    %cst_68 = arith.constant dense<0.000000e+00> : vector<2x10xf32>
    %133 = tpu.matmul %130, %132, %cst_68 {dimension_numbers = #tpu.dot_dimension_numbers<[1], [0], [0], [1], [0, 0, 1, 1], [], []>} : vector<2x28xf32>, vector<28x10xf32>, vector<2x10xf32> -> vector<2x10xf32>
    %134 = vector.extract_strided_slice %23 {offsets = [0, 0, 0], sizes = [1, 1, 10], strides = [1, 1, 1]} : vector<3x1x10xf32> to vector<1x1x10xf32>
    %135 = vector.shape_cast %134 : vector<1x1x10xf32> to vector<1x10xf32>
    %136 = vector.broadcast %135 : vector<1x10xf32> to vector<2x10xf32>
    %137 = arith.addf %133, %136 : vector<2x10xf32>
    %138 = vector.extract_strided_slice %19 {offsets = [1, 0, 0], sizes = [1, 28, 10], strides = [1, 1, 1]} : vector<3x28x10xf32> to vector<1x28x10xf32>
    %139 = vector.shape_cast %138 : vector<1x28x10xf32> to vector<28x10xf32>
    %cst_69 = arith.constant dense<0.000000e+00> : vector<2x10xf32>
    %140 = tpu.matmul %130, %139, %cst_69 {dimension_numbers = #tpu.dot_dimension_numbers<[1], [0], [0], [1], [0, 0, 1, 1], [], []>} : vector<2x28xf32>, vector<28x10xf32>, vector<2x10xf32> -> vector<2x10xf32>
    %141 = vector.extract_strided_slice %23 {offsets = [1, 0, 0], sizes = [1, 1, 10], strides = [1, 1, 1]} : vector<3x1x10xf32> to vector<1x1x10xf32>
    %142 = vector.shape_cast %141 : vector<1x1x10xf32> to vector<1x10xf32>
    %143 = vector.broadcast %142 : vector<1x10xf32> to vector<2x10xf32>
    %144 = arith.addf %140, %143 : vector<2x10xf32>
    %145 = vector.extract_strided_slice %19 {offsets = [2, 0, 0], sizes = [1, 28, 10], strides = [1, 1, 1]} : vector<3x28x10xf32> to vector<1x28x10xf32>
    %146 = vector.shape_cast %145 : vector<1x28x10xf32> to vector<28x10xf32>
    %cst_70 = arith.constant dense<0.000000e+00> : vector<2x10xf32>
    %147 = tpu.matmul %130, %146, %cst_70 {dimension_numbers = #tpu.dot_dimension_numbers<[1], [0], [0], [1], [0, 0, 1, 1], [], []>} : vector<2x28xf32>, vector<28x10xf32>, vector<2x10xf32> -> vector<2x10xf32>
    %148 = vector.extract_strided_slice %23 {offsets = [2, 0, 0], sizes = [1, 1, 10], strides = [1, 1, 1]} : vector<3x1x10xf32> to vector<1x1x10xf32>
    %149 = vector.shape_cast %148 : vector<1x1x10xf32> to vector<1x10xf32>
    %150 = vector.broadcast %149 : vector<1x10xf32> to vector<2x10xf32>
    %151 = arith.addf %147, %150 : vector<2x10xf32>
    %cst_71 = arith.constant 0.000000e+00 : f32
    %152 = vector.broadcast %cst_71 : f32 to vector<2x10xf32>
    %153 = vector.extract_strided_slice %8 {offsets = [0, 0, 0], sizes = [1, 2, 10], strides = [1, 1, 1]} : vector<2x2x10xf32> to vector<1x2x10xf32>
    %154 = vector.shape_cast %153 : vector<1x2x10xf32> to vector<2x10xf32>
    %155 = vector.extract_strided_slice %21 {offsets = [0, 0, 0], sizes = [1, 10, 10], strides = [1, 1, 1]} : vector<3x10x10xf32> to vector<1x10x10xf32>
    %156 = vector.shape_cast %155 : vector<1x10x10xf32> to vector<10x10xf32>
    %cst_72 = arith.constant dense<0.000000e+00> : vector<2x10xf32>
    %157 = tpu.matmul %154, %156, %cst_72 {dimension_numbers = #tpu.dot_dimension_numbers<[1], [0], [0], [1], [0, 0, 1, 1], [], []>} : vector<2x10xf32>, vector<10x10xf32>, vector<2x10xf32> -> vector<2x10xf32>
    %158 = vector.extract_strided_slice %25 {offsets = [0, 0, 0], sizes = [1, 1, 10], strides = [1, 1, 1]} : vector<3x1x10xf32> to vector<1x1x10xf32>
    %159 = vector.shape_cast %158 : vector<1x1x10xf32> to vector<1x10xf32>
    %160 = vector.broadcast %159 : vector<1x10xf32> to vector<2x10xf32>
    %161 = arith.addf %157, %160 : vector<2x10xf32>
    %162 = vector.extract_strided_slice %21 {offsets = [1, 0, 0], sizes = [1, 10, 10], strides = [1, 1, 1]} : vector<3x10x10xf32> to vector<1x10x10xf32>
    %163 = vector.shape_cast %162 : vector<1x10x10xf32> to vector<10x10xf32>
    %cst_73 = arith.constant dense<0.000000e+00> : vector<2x10xf32>
    %164 = tpu.matmul %154, %163, %cst_73 {dimension_numbers = #tpu.dot_dimension_numbers<[1], [0], [0], [1], [0, 0, 1, 1], [], []>} : vector<2x10xf32>, vector<10x10xf32>, vector<2x10xf32> -> vector<2x10xf32>
    %165 = vector.extract_strided_slice %25 {offsets = [1, 0, 0], sizes = [1, 1, 10], strides = [1, 1, 1]} : vector<3x1x10xf32> to vector<1x1x10xf32>
    %166 = vector.shape_cast %165 : vector<1x1x10xf32> to vector<1x10xf32>
    %167 = vector.broadcast %166 : vector<1x10xf32> to vector<2x10xf32>
    %168 = arith.addf %164, %167 : vector<2x10xf32>
    %169 = vector.extract_strided_slice %21 {offsets = [2, 0, 0], sizes = [1, 10, 10], strides = [1, 1, 1]} : vector<3x10x10xf32> to vector<1x10x10xf32>
    %170 = vector.shape_cast %169 : vector<1x10x10xf32> to vector<10x10xf32>
    %cst_74 = arith.constant dense<0.000000e+00> : vector<2x10xf32>
    %171 = tpu.matmul %154, %170, %cst_74 {dimension_numbers = #tpu.dot_dimension_numbers<[1], [0], [0], [1], [0, 0, 1, 1], [], []>} : vector<2x10xf32>, vector<10x10xf32>, vector<2x10xf32> -> vector<2x10xf32>
    %172 = vector.extract_strided_slice %25 {offsets = [2, 0, 0], sizes = [1, 1, 10], strides = [1, 1, 1]} : vector<3x1x10xf32> to vector<1x1x10xf32>
    %173 = vector.shape_cast %172 : vector<1x1x10xf32> to vector<1x10xf32>
    %174 = vector.broadcast %173 : vector<1x10xf32> to vector<2x10xf32>
    %175 = arith.addf %171, %174 : vector<2x10xf32>
    %176 = arith.addf %137, %161 : vector<2x10xf32>
    %177 = arith.negf %176 : vector<2x10xf32>
    %178 = math.exp %177 : vector<2x10xf32>
    %cst_75 = arith.constant 1.000000e+00 : f32
    %179 = vector.broadcast %cst_75 : f32 to vector<2x10xf32>
    %180 = arith.addf %179, %178 : vector<2x10xf32>
    %181 = arith.divf %179, %180 : vector<2x10xf32>
    %182 = arith.addf %144, %168 : vector<2x10xf32>
    %183 = arith.negf %182 : vector<2x10xf32>
    %184 = math.exp %183 : vector<2x10xf32>
    %cst_76 = arith.constant 1.000000e+00 : f32
    %185 = vector.broadcast %cst_76 : f32 to vector<2x10xf32>
    %186 = arith.addf %185, %184 : vector<2x10xf32>
    %187 = arith.divf %185, %186 : vector<2x10xf32>
    %188 = arith.mulf %181, %175 : vector<2x10xf32>
    %189 = arith.addf %151, %188 : vector<2x10xf32>
    %190 = math.tanh %189 : vector<2x10xf32>
    %cst_77 = arith.constant 1.000000e+00 : f32
    %191 = vector.broadcast %cst_77 : f32 to vector<2x10xf32>
    %192 = arith.subf %191, %187 : vector<2x10xf32>
    %193 = arith.mulf %192, %190 : vector<2x10xf32>
    %194 = arith.mulf %187, %154 : vector<2x10xf32>
    %195 = arith.addf %193, %194 : vector<2x10xf32>
    %196 = vector.extract_strided_slice %6 {offsets = [0, 0], sizes = [2, 1], strides = [1, 1]} : vector<2x2xf32> to vector<2x1xf32>
    %cst_78 = arith.constant 1.000000e+00 : f32
    %197 = vector.broadcast %cst_78 : f32 to vector<2x1xf32>
    %198 = arith.subf %197, %196 : vector<2x1xf32>
    %199 = vector.broadcast %198 : vector<2x1xf32> to vector<2x10xf32>
    %200 = arith.mulf %154, %199 : vector<2x10xf32>
    %201 = vector.broadcast %196 : vector<2x1xf32> to vector<2x10xf32>
    %202 = arith.mulf %195, %201 : vector<2x10xf32>
    %203 = arith.addf %200, %202 : vector<2x10xf32>
    %c0_79 = arith.constant 0 : index
    %c0_80 = arith.constant 0 : index
    %c0_81 = arith.constant 0 : index
    %204 = vector.load %arg16[%c0_79, %c0_80, %c0_81] : memref<2x2x10xf32, #tpu.memory_space<vmem>>, vector<1x2x10xf32>
    %205 = vector.shape_cast %204 : vector<1x2x10xf32> to vector<2x10xf32>
    %206 = vector.shape_cast %203 : vector<2x10xf32> to vector<1x2x10xf32>
    tpu.vector_store %arg16[%c0_79, %c0_80, %c0_81], %206 {strides = array<i32>} : memref<2x2x10xf32, #tpu.memory_space<vmem>>, vector<1x2x10xf32>,
    %207 = vector.broadcast %196 : vector<2x1xf32> to vector<2x10xf32>
    %208 = arith.mulf %207, %203 : vector<2x10xf32>
    %209 = arith.addf %152, %208 : vector<2x10xf32>
    %210 = vector.extract_strided_slice %8 {offsets = [1, 0, 0], sizes = [1, 2, 10], strides = [1, 1, 1]} : vector<2x2x10xf32> to vector<1x2x10xf32>
    %211 = vector.shape_cast %210 : vector<1x2x10xf32> to vector<2x10xf32>
    %212 = vector.extract_strided_slice %21 {offsets = [0, 0, 0], sizes = [1, 10, 10], strides = [1, 1, 1]} : vector<3x10x10xf32> to vector<1x10x10xf32>
    %213 = vector.shape_cast %212 : vector<1x10x10xf32> to vector<10x10xf32>
    %cst_82 = arith.constant dense<0.000000e+00> : vector<2x10xf32>
    %214 = tpu.matmul %211, %213, %cst_82 {dimension_numbers = #tpu.dot_dimension_numbers<[1], [0], [0], [1], [0, 0, 1, 1], [], []>} : vector<2x10xf32>, vector<10x10xf32>, vector<2x10xf32> -> vector<2x10xf32>
    %215 = vector.extract_strided_slice %25 {offsets = [0, 0, 0], sizes = [1, 1, 10], strides = [1, 1, 1]} : vector<3x1x10xf32> to vector<1x1x10xf32>
    %216 = vector.shape_cast %215 : vector<1x1x10xf32> to vector<1x10xf32>
    %217 = vector.broadcast %216 : vector<1x10xf32> to vector<2x10xf32>
    %218 = arith.addf %214, %217 : vector<2x10xf32>
    %219 = vector.extract_strided_slice %21 {offsets = [1, 0, 0], sizes = [1, 10, 10], strides = [1, 1, 1]} : vector<3x10x10xf32> to vector<1x10x10xf32>
    %220 = vector.shape_cast %219 : vector<1x10x10xf32> to vector<10x10xf32>
    %cst_83 = arith.constant dense<0.000000e+00> : vector<2x10xf32>
    %221 = tpu.matmul %211, %220, %cst_83 {dimension_numbers = #tpu.dot_dimension_numbers<[1], [0], [0], [1], [0, 0, 1, 1], [], []>} : vector<2x10xf32>, vector<10x10xf32>, vector<2x10xf32> -> vector<2x10xf32>
    %222 = vector.extract_strided_slice %25 {offsets = [1, 0, 0], sizes = [1, 1, 10], strides = [1, 1, 1]} : vector<3x1x10xf32> to vector<1x1x10xf32>
    %223 = vector.shape_cast %222 : vector<1x1x10xf32> to vector<1x10xf32>
    %224 = vector.broadcast %223 : vector<1x10xf32> to vector<2x10xf32>
    %225 = arith.addf %221, %224 : vector<2x10xf32>
    %226 = vector.extract_strided_slice %21 {offsets = [2, 0, 0], sizes = [1, 10, 10], strides = [1, 1, 1]} : vector<3x10x10xf32> to vector<1x10x10xf32>
    %227 = vector.shape_cast %226 : vector<1x10x10xf32> to vector<10x10xf32>
    %cst_84 = arith.constant dense<0.000000e+00> : vector<2x10xf32>
    %228 = tpu.matmul %211, %227, %cst_84 {dimension_numbers = #tpu.dot_dimension_numbers<[1], [0], [0], [1], [0, 0, 1, 1], [], []>} : vector<2x10xf32>, vector<10x10xf32>, vector<2x10xf32> -> vector<2x10xf32>
    %229 = vector.extract_strided_slice %25 {offsets = [2, 0, 0], sizes = [1, 1, 10], strides = [1, 1, 1]} : vector<3x1x10xf32> to vector<1x1x10xf32>
    %230 = vector.shape_cast %229 : vector<1x1x10xf32> to vector<1x10xf32>
    %231 = vector.broadcast %230 : vector<1x10xf32> to vector<2x10xf32>
    %232 = arith.addf %228, %231 : vector<2x10xf32>
    %233 = arith.addf %137, %218 : vector<2x10xf32>
    %234 = arith.negf %233 : vector<2x10xf32>
    %235 = math.exp %234 : vector<2x10xf32>
    %cst_85 = arith.constant 1.000000e+00 : f32
    %236 = vector.broadcast %cst_85 : f32 to vector<2x10xf32>
    %237 = arith.addf %236, %235 : vector<2x10xf32>
    %238 = arith.divf %236, %237 : vector<2x10xf32>
    %239 = arith.addf %144, %225 : vector<2x10xf32>
    %240 = arith.negf %239 : vector<2x10xf32>
    %241 = math.exp %240 : vector<2x10xf32>
    %cst_86 = arith.constant 1.000000e+00 : f32
    %242 = vector.broadcast %cst_86 : f32 to vector<2x10xf32>
    %243 = arith.addf %242, %241 : vector<2x10xf32>
    %244 = arith.divf %242, %243 : vector<2x10xf32>
    %245 = arith.mulf %238, %232 : vector<2x10xf32>
    %246 = arith.addf %151, %245 : vector<2x10xf32>
    %247 = math.tanh %246 : vector<2x10xf32>
    %cst_87 = arith.constant 1.000000e+00 : f32
    %248 = vector.broadcast %cst_87 : f32 to vector<2x10xf32>
    %249 = arith.subf %248, %244 : vector<2x10xf32>
    %250 = arith.mulf %249, %247 : vector<2x10xf32>
    %251 = arith.mulf %244, %211 : vector<2x10xf32>
    %252 = arith.addf %250, %251 : vector<2x10xf32>
    %253 = vector.extract_strided_slice %6 {offsets = [0, 1], sizes = [2, 1], strides = [1, 1]} : vector<2x2xf32> to vector<2x1xf32>
    %cst_88 = arith.constant 1.000000e+00 : f32
    %254 = vector.broadcast %cst_88 : f32 to vector<2x1xf32>
    %255 = arith.subf %254, %253 : vector<2x1xf32>
    %256 = vector.broadcast %255 : vector<2x1xf32> to vector<2x10xf32>
    %257 = arith.mulf %211, %256 : vector<2x10xf32>
    %258 = vector.broadcast %253 : vector<2x1xf32> to vector<2x10xf32>
    %259 = arith.mulf %252, %258 : vector<2x10xf32>
    %260 = arith.addf %257, %259 : vector<2x10xf32>
    %c1 = arith.constant 1 : index
    %c0_89 = arith.constant 0 : index
    %c0_90 = arith.constant 0 : index
    %261 = vector.load %arg16[%c1, %c0_89, %c0_90] : memref<2x2x10xf32, #tpu.memory_space<vmem>>, vector<1x2x10xf32>
    %262 = vector.shape_cast %261 : vector<1x2x10xf32> to vector<2x10xf32>
    %263 = vector.shape_cast %260 : vector<2x10xf32> to vector<1x2x10xf32>
    tpu.vector_store %arg16[%c1, %c0_89, %c0_90], %263 {strides = array<i32>} : memref<2x2x10xf32, #tpu.memory_space<vmem>>, vector<1x2x10xf32>,
    %264 = vector.broadcast %253 : vector<2x1xf32> to vector<2x10xf32>
    %265 = arith.mulf %264, %260 : vector<2x10xf32>
    %266 = arith.addf %209, %265 : vector<2x10xf32>
    %267 = arith.index_cast %arg1 : i32 to index
    %c0_91 = arith.constant 0 : index
    %c0_92 = arith.constant 0 : index
    %268 = vector.load %arg14[%267, %c0_91, %c0_92] : memref<8x2x12xf32, #tpu.memory_space<vmem>>, vector<1x2x12xf32>
    %269 = vector.shape_cast %268 : vector<1x2x12xf32> to vector<2x12xf32>
    %270 = vector.shape_cast %103 : vector<2x12xf32> to vector<1x2x12xf32>
    tpu.vector_store %arg14[%267, %c0_91, %c0_92], %270 {strides = array<i32>} : memref<8x2x12xf32, #tpu.memory_space<vmem>>, vector<1x2x12xf32>,
    %c0_93 = arith.constant 0 : index
    %c0_94 = arith.constant 0 : index
    %271 = vector.load %arg15[%c0_93, %c0_94] : memref<2x12xf32, #tpu.memory_space<vmem>>, vector<2x12xf32>
    tpu.vector_store %arg15[%c0_93, %c0_94], %103 {strides = array<i32>} : memref<2x12xf32, #tpu.memory_space<vmem>>, vector<2x12xf32>,
    %272 = vector.shape_cast %266 : vector<2x10xf32> to vector<1x1x2x10xf32>
    %c0_95 = arith.constant 0 : index
    %c0_96 = arith.constant 0 : index
    %c0_97 = arith.constant 0 : index
    %c0_98 = arith.constant 0 : index
    %273 = vector.load %arg13[%c0_95, %c0_96, %c0_97, %c0_98] : memref<1x1x2x10xf32, #tpu.memory_space<vmem>>, vector<1x1x2x10xf32>
    tpu.vector_store %arg13[%c0_95, %c0_96, %c0_97, %c0_98], %272 {strides = array<i32>} : memref<1x1x2x10xf32, #tpu.memory_space<vmem>>, vector<1x1x2x10xf32>,
    return
  }
  func.func @transform_0(%arg0: i32, %arg1: i32) -> (i32, i32, i32, i32) {
    %c0_i32 = arith.constant 0 : i32
    %c0_i32_0 = arith.constant 0 : i32
    %c0_i32_1 = arith.constant 0 : i32
    return %arg0, %arg1, %c0_i32, %c0_i32_0 : i32, i32, i32, i32
  }
  func.func @transform_1(%arg0: i32, %arg1: i32) -> (i32, i32, i32, i32) {
    %c0_i32 = arith.constant 0 : i32
    %c0_i32_0 = arith.constant 0 : i32
    %c0_i32_1 = arith.constant 0 : i32
    return %arg0, %arg1, %c0_i32, %c0_i32_0 : i32, i32, i32, i32
  }
  func.func @transform_2(%arg0: i32, %arg1: i32) -> (i32, i32, i32, i32) {
    %c0_i32 = arith.constant 0 : i32
    %c0_i32_0 = arith.constant 0 : i32
    %c0_i32_1 = arith.constant 0 : i32
    %c0_i32_2 = arith.constant 0 : i32
    return %arg0, %c0_i32, %c0_i32_0, %c0_i32_1 : i32, i32, i32, i32
  }
  func.func @transform_3(%arg0: i32, %arg1: i32) -> (i32, i32, i32, i32) {
    %c0_i32 = arith.constant 0 : i32
    %c0_i32_0 = arith.constant 0 : i32
    %c0_i32_1 = arith.constant 0 : i32
    %c0_i32_2 = arith.constant 0 : i32
    return %arg0, %c0_i32, %c0_i32_0, %c0_i32_1 : i32, i32, i32, i32
  }
  func.func @transform_4(%arg0: i32, %arg1: i32) -> (i32, i32, i32, i32) {
    %c0_i32 = arith.constant 0 : i32
    %c0_i32_0 = arith.constant 0 : i32
    %c0_i32_1 = arith.constant 0 : i32
    %c0_i32_2 = arith.constant 0 : i32
    return %arg0, %c0_i32, %c0_i32_0, %c0_i32_1 : i32, i32, i32, i32
  }
  func.func @transform_5(%arg0: i32, %arg1: i32) -> (i32, i32, i32, i32) {
    %c0_i32 = arith.constant 0 : i32
    %c0_i32_0 = arith.constant 0 : i32
    %c0_i32_1 = arith.constant 0 : i32
    %c0_i32_2 = arith.constant 0 : i32
    return %arg0, %c0_i32, %c0_i32_0, %c0_i32_1 : i32, i32, i32, i32
  }
  func.func @transform_6(%arg0: i32, %arg1: i32) -> (i32, i32, i32, i32) {
    %c0_i32 = arith.constant 0 : i32
    %c0_i32_0 = arith.constant 0 : i32
    %c0_i32_1 = arith.constant 0 : i32
    %c0_i32_2 = arith.constant 0 : i32
    return %arg0, %c0_i32, %c0_i32_0, %c0_i32_1 : i32, i32, i32, i32
  }
  func.func @transform_7(%arg0: i32, %arg1: i32) -> (i32, i32, i32, i32) {
    %c0_i32 = arith.constant 0 : i32
    %c0_i32_0 = arith.constant 0 : i32
    %c0_i32_1 = arith.constant 0 : i32
    %c0_i32_2 = arith.constant 0 : i32
    return %arg0, %c0_i32, %c0_i32_0, %c0_i32_1 : i32, i32, i32, i32
  }
  func.func @transform_8(%arg0: i32, %arg1: i32) -> (i32, i32, i32, i32) {
    %c0_i32 = arith.constant 0 : i32
    %c0_i32_0 = arith.constant 0 : i32
    %c0_i32_1 = arith.constant 0 : i32
    %c0_i32_2 = arith.constant 0 : i32
    return %arg0, %c0_i32, %c0_i32_0, %c0_i32_1 : i32, i32, i32, i32
  }
  func.func @transform_9(%arg0: i32, %arg1: i32) -> (i32, i32, i32, i32) {
    %c0_i32 = arith.constant 0 : i32
    %c0_i32_0 = arith.constant 0 : i32
    %c0_i32_1 = arith.constant 0 : i32
    %c0_i32_2 = arith.constant 0 : i32
    return %arg0, %c0_i32, %c0_i32_0, %c0_i32_1 : i32, i32, i32, i32
  }
  func.func @transform_10(%arg0: i32, %arg1: i32) -> (i32, i32, i32) {
    %c0_i32 = arith.constant 0 : i32
    %c0_i32_0 = arith.constant 0 : i32
    %c0_i32_1 = arith.constant 0 : i32
    return %arg0, %c0_i32, %c0_i32_0 : i32, i32, i32
  }
  func.func @transform_11(%arg0: i32, %arg1: i32) -> (i32, i32, i32, i32) {
    %c0_i32 = arith.constant 0 : i32
    %c0_i32_0 = arith.constant 0 : i32
    %c0_i32_1 = arith.constant 0 : i32
    return %arg0, %arg1, %c0_i32, %c0_i32_0 : i32, i32, i32, i32
  }
}

module attributes {stable_mosaic.version = 11 : i64} {
  func.func @_attn_head_kernel(%arg0: memref<8x2x16xf32, #tpu.memory_space<vmem>>, %arg1: memref<16x16xf32, #tpu.memory_space<vmem>>, %arg2: memref<16x32xf32, #tpu.memory_space<vmem>>, %arg3: memref<1x32xf32, #tpu.memory_space<vmem>>, %arg4: memref<32x6xf32, #tpu.memory_space<vmem>>, %arg5: memref<1x6xf32, #tpu.memory_space<vmem>>, %arg6: memref<8x2x6xf32, #tpu.memory_space<vmem>>) attributes {dimension_semantics = [], scalar_prefetch = 0 : i64, scratch_operands = 0 : i64, tpu.core_type = #tpu.core_type<tc>} {
    %c0 = arith.constant 0 : index
    %c0_0 = arith.constant 0 : index
    %c0_1 = arith.constant 0 : index
    %0 = vector.load %arg0[%c0, %c0_0, %c0_1] : memref<8x2x16xf32, #tpu.memory_space<vmem>>, vector<8x2x16xf32>
    %c0_2 = arith.constant 0 : index
    %c0_3 = arith.constant 0 : index
    %1 = vector.load %arg1[%c0_2, %c0_3] : memref<16x16xf32, #tpu.memory_space<vmem>>, vector<16x16xf32>
    %c0_4 = arith.constant 0 : index
    %c0_5 = arith.constant 0 : index
    %2 = vector.load %arg2[%c0_4, %c0_5] : memref<16x32xf32, #tpu.memory_space<vmem>>, vector<16x32xf32>
    %c0_6 = arith.constant 0 : index
    %c0_7 = arith.constant 0 : index
    %3 = vector.load %arg3[%c0_6, %c0_7] : memref<1x32xf32, #tpu.memory_space<vmem>>, vector<1x32xf32>
    %c0_8 = arith.constant 0 : index
    %c0_9 = arith.constant 0 : index
    %4 = vector.load %arg4[%c0_8, %c0_9] : memref<32x6xf32, #tpu.memory_space<vmem>>, vector<32x6xf32>
    %c0_10 = arith.constant 0 : index
    %c0_11 = arith.constant 0 : index
    %5 = vector.load %arg5[%c0_10, %c0_11] : memref<1x6xf32, #tpu.memory_space<vmem>>, vector<1x6xf32>
    %6 = vector.extract_strided_slice %0 {offsets = [0, 0, 0], sizes = [8, 1, 16], strides = [1, 1, 1]} : vector<8x2x16xf32> to vector<8x1x16xf32>
    %7 = vector.shape_cast %6 : vector<8x1x16xf32> to vector<8x16xf32>
    %cst = arith.constant dense<0.000000e+00> : vector<8x16xf32>
    %8 = tpu.matmul %7, %1, %cst {dimension_numbers = #tpu.dot_dimension_numbers<[1], [0], [0], [1], [0, 0, 1, 1], [], []>} : vector<8x16xf32>, vector<16x16xf32>, vector<8x16xf32> -> vector<8x16xf32>
    %cst_12 = arith.constant dense<0.000000e+00> : vector<8x8xf32>
    %9 = tpu.matmul %8, %7, %cst_12 {dimension_numbers = #tpu.dot_dimension_numbers<[1], [1], [0], [0], [0, 0, 1, 0], [], []>} : vector<8x16xf32>, vector<8x16xf32>, vector<8x8xf32> -> vector<8x8xf32>
    %cst_13 = arith.constant dense<0xFF800000> : vector<8xf32>
    %10 = vector.multi_reduction <maximumf>, %9, %cst_13 [1] : vector<8x8xf32> to vector<8xf32>
    %11 = vector.shape_cast %10 : vector<8xf32> to vector<8x1xf32>
    %12 = vector.broadcast %11 : vector<8x1xf32> to vector<8x8xf32>
    %13 = arith.subf %9, %12 : vector<8x8xf32>
    %14 = math.exp %13 : vector<8x8xf32>
    %cst_14 = arith.constant dense<0.000000e+00> : vector<8xf32>
    %15 = vector.multi_reduction <add>, %14, %cst_14 [1] : vector<8x8xf32> to vector<8xf32>
    %16 = vector.shape_cast %15 : vector<8xf32> to vector<8x1xf32>
    %17 = vector.broadcast %16 : vector<8x1xf32> to vector<8x8xf32>
    %18 = arith.divf %14, %17 : vector<8x8xf32>
    %cst_15 = arith.constant dense<0.000000e+00> : vector<8x16xf32>
    %19 = tpu.matmul %18, %7, %cst_15 {dimension_numbers = #tpu.dot_dimension_numbers<[1], [0], [0], [1], [0, 0, 1, 1], [], []>} : vector<8x8xf32>, vector<8x16xf32>, vector<8x16xf32> -> vector<8x16xf32>
    %cst_16 = arith.constant dense<0.000000e+00> : vector<8x32xf32>
    %20 = tpu.matmul %19, %2, %cst_16 {dimension_numbers = #tpu.dot_dimension_numbers<[1], [0], [0], [1], [0, 0, 1, 1], [], []>} : vector<8x16xf32>, vector<16x32xf32>, vector<8x32xf32> -> vector<8x32xf32>
    %21 = vector.broadcast %3 : vector<1x32xf32> to vector<8x32xf32>
    %22 = arith.addf %20, %21 : vector<8x32xf32>
    %cst_17 = arith.constant 0.000000e+00 : f32
    %23 = vector.broadcast %cst_17 : f32 to vector<8x32xf32>
    %24 = arith.maximumf %22, %23 : vector<8x32xf32>
    %cst_18 = arith.constant dense<0.000000e+00> : vector<8x6xf32>
    %25 = tpu.matmul %24, %4, %cst_18 {dimension_numbers = #tpu.dot_dimension_numbers<[1], [0], [0], [1], [0, 0, 1, 1], [], []>} : vector<8x32xf32>, vector<32x6xf32>, vector<8x6xf32> -> vector<8x6xf32>
    %26 = vector.broadcast %5 : vector<1x6xf32> to vector<8x6xf32>
    %27 = arith.addf %25, %26 : vector<8x6xf32>
    %cst_19 = arith.constant dense<0xFF800000> : vector<8xf32>
    %28 = vector.multi_reduction <maximumf>, %27, %cst_19 [1] : vector<8x6xf32> to vector<8xf32>
    %29 = vector.shape_cast %28 : vector<8xf32> to vector<8x1xf32>
    %30 = vector.broadcast %29 : vector<8x1xf32> to vector<8x6xf32>
    %31 = arith.subf %27, %30 : vector<8x6xf32>
    %32 = math.exp %31 : vector<8x6xf32>
    %cst_20 = arith.constant dense<0.000000e+00> : vector<8xf32>
    %33 = vector.multi_reduction <add>, %32, %cst_20 [1] : vector<8x6xf32> to vector<8xf32>
    %34 = vector.shape_cast %33 : vector<8xf32> to vector<8x1xf32>
    %35 = math.log %34 : vector<8x1xf32>
    %36 = arith.addf %29, %35 : vector<8x1xf32>
    %37 = vector.broadcast %36 : vector<8x1xf32> to vector<8x6xf32>
    %38 = arith.subf %27, %37 : vector<8x6xf32>
    %39 = vector.shape_cast %38 : vector<8x6xf32> to vector<8x1x6xf32>
    %40 = vector.extract_strided_slice %0 {offsets = [0, 1, 0], sizes = [8, 1, 16], strides = [1, 1, 1]} : vector<8x2x16xf32> to vector<8x1x16xf32>
    %41 = vector.shape_cast %40 : vector<8x1x16xf32> to vector<8x16xf32>
    %cst_21 = arith.constant dense<0.000000e+00> : vector<8x16xf32>
    %42 = tpu.matmul %41, %1, %cst_21 {dimension_numbers = #tpu.dot_dimension_numbers<[1], [0], [0], [1], [0, 0, 1, 1], [], []>} : vector<8x16xf32>, vector<16x16xf32>, vector<8x16xf32> -> vector<8x16xf32>
    %cst_22 = arith.constant dense<0.000000e+00> : vector<8x8xf32>
    %43 = tpu.matmul %42, %41, %cst_22 {dimension_numbers = #tpu.dot_dimension_numbers<[1], [1], [0], [0], [0, 0, 1, 0], [], []>} : vector<8x16xf32>, vector<8x16xf32>, vector<8x8xf32> -> vector<8x8xf32>
    %cst_23 = arith.constant dense<0xFF800000> : vector<8xf32>
    %44 = vector.multi_reduction <maximumf>, %43, %cst_23 [1] : vector<8x8xf32> to vector<8xf32>
    %45 = vector.shape_cast %44 : vector<8xf32> to vector<8x1xf32>
    %46 = vector.broadcast %45 : vector<8x1xf32> to vector<8x8xf32>
    %47 = arith.subf %43, %46 : vector<8x8xf32>
    %48 = math.exp %47 : vector<8x8xf32>
    %cst_24 = arith.constant dense<0.000000e+00> : vector<8xf32>
    %49 = vector.multi_reduction <add>, %48, %cst_24 [1] : vector<8x8xf32> to vector<8xf32>
    %50 = vector.shape_cast %49 : vector<8xf32> to vector<8x1xf32>
    %51 = vector.broadcast %50 : vector<8x1xf32> to vector<8x8xf32>
    %52 = arith.divf %48, %51 : vector<8x8xf32>
    %cst_25 = arith.constant dense<0.000000e+00> : vector<8x16xf32>
    %53 = tpu.matmul %52, %41, %cst_25 {dimension_numbers = #tpu.dot_dimension_numbers<[1], [0], [0], [1], [0, 0, 1, 1], [], []>} : vector<8x8xf32>, vector<8x16xf32>, vector<8x16xf32> -> vector<8x16xf32>
    %cst_26 = arith.constant dense<0.000000e+00> : vector<8x32xf32>
    %54 = tpu.matmul %53, %2, %cst_26 {dimension_numbers = #tpu.dot_dimension_numbers<[1], [0], [0], [1], [0, 0, 1, 1], [], []>} : vector<8x16xf32>, vector<16x32xf32>, vector<8x32xf32> -> vector<8x32xf32>
    %55 = vector.broadcast %3 : vector<1x32xf32> to vector<8x32xf32>
    %56 = arith.addf %54, %55 : vector<8x32xf32>
    %cst_27 = arith.constant 0.000000e+00 : f32
    %57 = vector.broadcast %cst_27 : f32 to vector<8x32xf32>
    %58 = arith.maximumf %56, %57 : vector<8x32xf32>
    %cst_28 = arith.constant dense<0.000000e+00> : vector<8x6xf32>
    %59 = tpu.matmul %58, %4, %cst_28 {dimension_numbers = #tpu.dot_dimension_numbers<[1], [0], [0], [1], [0, 0, 1, 1], [], []>} : vector<8x32xf32>, vector<32x6xf32>, vector<8x6xf32> -> vector<8x6xf32>
    %60 = vector.broadcast %5 : vector<1x6xf32> to vector<8x6xf32>
    %61 = arith.addf %59, %60 : vector<8x6xf32>
    %cst_29 = arith.constant dense<0xFF800000> : vector<8xf32>
    %62 = vector.multi_reduction <maximumf>, %61, %cst_29 [1] : vector<8x6xf32> to vector<8xf32>
    %63 = vector.shape_cast %62 : vector<8xf32> to vector<8x1xf32>
    %64 = vector.broadcast %63 : vector<8x1xf32> to vector<8x6xf32>
    %65 = arith.subf %61, %64 : vector<8x6xf32>
    %66 = math.exp %65 : vector<8x6xf32>
    %cst_30 = arith.constant dense<0.000000e+00> : vector<8xf32>
    %67 = vector.multi_reduction <add>, %66, %cst_30 [1] : vector<8x6xf32> to vector<8xf32>
    %68 = vector.shape_cast %67 : vector<8xf32> to vector<8x1xf32>
    %69 = math.log %68 : vector<8x1xf32>
    %70 = arith.addf %63, %69 : vector<8x1xf32>
    %71 = vector.broadcast %70 : vector<8x1xf32> to vector<8x6xf32>
    %72 = arith.subf %61, %71 : vector<8x6xf32>
    %73 = vector.shape_cast %72 : vector<8x6xf32> to vector<8x1x6xf32>
    %74 = tpu.concatenate %39, %73 in 1 : vector<8x1x6xf32>, vector<8x1x6xf32> -> vector<8x2x6xf32>
    %c0_31 = arith.constant 0 : index
    %c0_32 = arith.constant 0 : index
    %c0_33 = arith.constant 0 : index
    %75 = vector.load %arg6[%c0_31, %c0_32, %c0_33] : memref<8x2x6xf32, #tpu.memory_space<vmem>>, vector<8x2x6xf32>
    tpu.vector_store %arg6[%c0_31, %c0_32, %c0_33], %74 {strides = array<i32>} : memref<8x2x6xf32, #tpu.memory_space<vmem>>, vector<8x2x6xf32>,
    return
  }
}

</mosaic_0001>

<bundles_post_ra>
// kernel: birnn_forward.4
= control target key start
LH: loop header
LB: loop body
LE: loop exit
PB: predicated region body
PF: predicated region fallthrough
CT: control target
= control target key end

     0   :  { %s805_s15 = smov 0   ;;  %s862_s0 = inlined_call_operand.vmem [shape: f32[2,16,10], index: 0, kind: input, shape index: {}]   ;;  %s863_s1 = inlined_call_operand.vmem [shape: f32[2,3,10,8], index: 1, kind: input, shape index: {}]   ;;  %s864_s2 = inlined_call_operand.vmem [shape: f32[2,3,1,8], index: 2, kind: input, shape index: {}]   ;;  %s865_s3 = inlined_call_operand.vmem [shape: f32[2,3,1,8], index: 3, kind: input, shape index: {}]   ;;  %s866_s4 = inlined_call_operand.vmem [shape: f32[2,16,8], index: 4, kind: output, shape index: {}]  }
   0x1 LB: > { %s676_s16 = sadd.s32 4294967295, %s778_s15   ;;  %p680_p0 = scmp.ge.s32.totalorder %s778_s15, 1  ;;  %s778_s15 = sphi %s805_s15, %s14_s15  }
   0x2   : > { %p190_p1 = scmp.lt.s32.totalorder %s778_s15, 3 }
   0x4   : > { %p191_p2 = pnand %p680_p0, %p190_p1 }
   0x5   : > { %p229_p3 = scmp.lt.s32.totalorder (!%p191_p2), %s676_s16, 1 }
   0x6   : > { %194 = sbr.rel (%p191_p2) target bundleno = 272 (0x110), region = 36 }
   0xb   : > { %s868_s16 = smov (!%p229_p3, %s676_s16), 1  ;;  %vm272_vm0 = vcmask 80896   ;;  %vm279_vm1 = vcmask 1041408   ;;  %vm582_vm2 = vcmask 64512  }
   0xc   : > { %s742_s17 = smul.u32 48, %s868_s16  ;;  %s707_s18 = sshll.u32 %s868_s16, 4 }
   0xd   : > { %s233_s21 = scalar_lea.vmem %s862_s0, %s707_s18  ;;  %s743_s25 = smul.u32 3, %s868_s16 }
   0xe   : > { %s238_s24 = scalar_lea.vmem %s863_s1, %s742_s17  ;;  %v252_v0 = vld [vmem:[%s233_s21] sm:$0xff]  ;;  %v253_v5 = vld [vmem:[%s233_s21 + $0x8] sm:$0xff]  ;;  %s251_s8 = scalar_lea.vmem %s866_s4, %s707_s18 }
   0xf   : > { %v255_v1 = vld [vmem:[%s238_s24 + $0x8] sm:$0x3]  ;;  %v254_v2 = vld [vmem:[%s238_s24] sm:$0xff]  ;;  %725 = vmatprep.mubr.msk.f32.mxu0 %vm272_vm0, %v252_v0  ;;  %v257_v3 = vld [vmem:[%s238_s24 + $0x18] sm:$0x3]  ;;  %732 = vmatprep.mubr.msk.f32.mxu1 %vm272_vm0, %v252_v0  ;;  %s841_s28 = scalar_lea.vmem %s864_s2, %s743_s25  ;;  %s846_s5 = scalar_lea.vmem %s865_s3, %s743_s25 }
  0x10   : > { %721 = vmatprep.subr.msk.mxu0 %vm279_vm1, %v255_v1  ;;  %728 = vmatprep.subr.msk.mxu1 %vm279_vm1, %v257_v3  ;;  %v256_v4 = vld [vmem:[%s238_s24 + $0x10] sm:$0xff]  ;;  %v259_v6 = vld [vmem:[%s238_s24 + $0x28] sm:$0x3]  ;;  %v258_v7 = vld [vmem:[%s238_s24 + $0x20] sm:$0xff] }
  0x11   : > { %722 = vmatpush3.msk.msra.mxu0 %vm279_vm1, %v255_v1  ;;  %729 = vmatpush3.msk.msra.mxu1 %vm279_vm1, %v257_v3  ;;  %v686_v8 = vld [vmem:[%s841_s28] ss:$0 sm:$0xff]  ;;  %v690_v12 = vld [vmem:[%s841_s28 + $0x1] ss:$0 sm:$0xff]  ;;  %v694_v36 = vld [vmem:[%s841_s28 + $0x2] ss:$0 sm:$0xff] }
  0x12   : > { %723 = vmatprep.subr.mxu0 %v254_v2  ;;  %730 = vmatprep.subr.mxu1 %v256_v4  ;;  %v698_v9 = vld [vmem:[%s846_s5] ss:$0 sm:$0xff]  ;;  %v701_v18 = vld [vmem:[%s846_s5 + $0x1] ss:$0 sm:$0xff]  ;;  %v704_v37 = vld [vmem:[%s846_s5 + $0x2] ss:$0 sm:$0xff] }
  0x13   : > { %724 = vmatpush3.msra.mxu0 %v254_v2  ;;  %731 = vmatpush3.msra.mxu1 %v256_v4 }
  0x14   : > { %726 = vmatmul.mubr.msk.f32.vlgmr.msra.gmra.mxu0 %vm272_vm0, %v253_v5  ;;  %733 = vmatmul.mubr.msk.f32.vlgmr.msra.gmra.mxu1 %vm272_vm0, %v253_v5 }
  0x15   : > { %735 = vmatprep.subr.msk.mxu0 %vm279_vm1, %v259_v6  ;;  %739 = vmatprep.mubr.msk.f32.mxu0 %vm272_vm0, %v252_v0 }
  0x16   : > { %736 = vmatpush3.msk.msra.mxu0 %vm279_vm1, %v259_v6 }
  0x17   : > { %737 = vmatprep.subr.mxu0 %v258_v7 }
  0x18   : > { %738 = vmatpush3.msra.mxu0 %v258_v7 }
  0x19   : > { %740 = vmatmul.mubr.msk.f32.vlgmr.msra.gmra.mxu0 %vm272_vm0, %v253_v5 }
  0xd4   : > { %v727_v10 = vpop.f32.mrf.mxu0  ;;  %v734_v11 = vpop.f32.mrf.mxu1 }
  0xd5   : > { %v355_v13 = vadd.f32 %v727_v10, %v686_v8  ;;  %v439_v17 = vadd.f32 %v734_v11, %v690_v12 }
  0xd6   : > { %v349_v14 = vpop.f32.mrf.mxu0  ;;  %v433_v19 = vpop.f32.mrf.mxu1 }
  0xd7   : > { %v533_v15 = vadd.f32 %v698_v9, %v355_v13  ;;  %v350_v16 = vadd.f32 %v686_v8, %v349_v14  ;;  %v553_v23 = vadd.f32 %v701_v18, %v439_v17  ;;  %v434_v24 = vadd.f32 %v690_v12, %v433_v19 }
  0xd9   : > { %v700_v20 = vmul.f32 -1.442695, %v533_v15  ;;  %v532_v21 = vadd.f32 %v698_v9, %v350_v16  ;;  %v703_v25 = vmul.f32 -1.442695, %v553_v23  ;;  %v552_v26 = vadd.f32 %v701_v18, %v434_v24  ;;  %v741_v35 = vpop.f32.mrf.mxu0 }
  0xda   : > { %v523_v39 = vadd.f32 %v741_v35, %v694_v36 }
  0xdb   : > { %752 = vpow2.f32 %v700_v20  ;;  %v699_v22 = vmul.f32 -1.442695, %v532_v21  ;;  %v702_v27 = vmul.f32 -1.442695, %v552_v26  ;;  %v517_v41 = vpop.f32.mrf.mxu0 }
  0xdc   : > { %v518_v45 = vadd.f32 %v694_v36, %v517_v41 }
  0xdd   : > { %754 = vpow2.f32 %v699_v22 }
  0xde   : > { %756 = vpow2.f32 %v703_v25 }
  0xdf   : > { %758 = vpow2.f32 %v702_v27 }
  0xe8   : > { %v753_v28 = vpop.eup %752 }
  0xe9   : > { %v541_v29 = vadd.f32 1.0, %v753_v28 }
  0xea   : > { %v755_v30 = vpop.eup %754 }
  0xeb   : > { %760 = vrcp.f32 %v541_v29  ;;  %v540_v31 = vadd.f32 1.0, %v755_v30  ;;  %v757_v32 = vpop.eup %756 }
  0xec   : > { %v561_v33 = vadd.f32 1.0, %v757_v32  ;;  %v759_v34 = vpop.eup %758 }
  0xed   : > { %762 = vrcp.f32 %v540_v31  ;;  %v560_v38 = vadd.f32 1.0, %v759_v34 }
  0xee   : > { %764 = vrcp.f32 %v561_v33 }
  0xef   : > { %766 = vrcp.f32 %v560_v38 }
  0xf8   : > { %v761_v40 = vpop.eup %760 }
  0xf9   : > { %v573_v42 = vmul.f32 %v761_v40, %v704_v37 }
  0xfa   : > { %v763_v43 = vpop.eup %762 }
  0xfb   : > { %v575_v44 = vadd.f32 %v573_v42, %v523_v39  ;;  %v572_v46 = vmul.f32 %v763_v43, %v704_v37  ;;  %v765_v48 = vpop.eup %764 }
  0xfc   : > { %v579_v49 = vsub.f32 1.0, %v765_v48  ;;  %v767_v50 = vpop.eup %766 }
  0xfd   : > { %768 = vtanh.f32 %v575_v44  ;;  %v574_v47 = vadd.f32 %v572_v46, %v518_v45  ;;  %v578_v52 = vsub.f32 1.0, %v767_v50 }
  0xff   : > { %770 = vtanh.f32 %v574_v47 }
 0x10a   : > { %v769_v51 = vpop.eup %768 }
 0x10b   : > { %v581_v53 = vmul.f32 %v769_v51, %v579_v49 }
 0x10c   : > { %v771_v54 = vpop.eup %770 }
 0x10d   : > { %584 = vst.msk [vmem:[%s251_s8 + $0x8] sm:$0xff] %vm582_vm2, %v581_v53  ;;  %v580_v55 = vmul.f32 %v771_v54, %v578_v52 }
 0x10f   : > { %583 = vst.msk [vmem:[%s251_s8] sm:$0xff] %vm582_vm2, %v580_v55 }
 0x110 PF: > { %s14_s15 = sadd.s32 1, %s778_s15  }
 0x111   : > { %p11_p4 = scmp.ge.s32.totalorder %s14_s15, 4  }
 0x113   :  { %13 = sbr.rel (!%p11_p4) target bundleno = 1 (0x1), region = 75 }

// kernel: birnn_forward.5
= control target key start
LH: loop header
LB: loop body
LE: loop exit
PB: predicated region body
PF: predicated region fallthrough
CT: control target
= control target key end

     0   :  { %v1183_v0 = vmov 0.0   ;;  %vm1184_vm0 = vmmov 0   ;;  %vm50_vm1 = vcmask 1041409   ;;  %vm53_vm2 = vcmask 1042434   ;;  %s1441_s1 = inlined_call_operand.vmem [shape: f32[16,16], index: 1, kind: input, shape index: {}]   ;;  %s1442_s0 = inlined_call_operand.vmem [shape: f32[8,2,16], index: 0, kind: input, shape index: {}]   ;;  %s1443_s2 = inlined_call_operand.vmem [shape: f32[16,32], index: 2, kind: input, shape index: {}]   ;;  %s1444_s4 = inlined_call_operand.vmem [shape: f32[32,6], index: 4, kind: input, shape index: {}]   ;;  %s1445_s3 = inlined_call_operand.vmem [shape: f32[1,32], index: 3, kind: input, shape index: {}]   ;;  %s1446_s5 = inlined_call_operand.vmem [shape: f32[1,6], index: 5, kind: input, shape index: {}]   ;;  %s1447_s6 = inlined_call_operand.vmem [shape: f32[8,2,6], index: 6, kind: output, shape index: {}]  }
   0x1   :  { %1094 = vmatprep.subr.mxu1 %v1183_v0  ;;  %v1225_v1 = vld [vmem:[%s1441_s1 + $0x8] sm:$0xff]  ;;  %v1230_v2 = vld [vmem:[%s1441_s1] sm:$0xff]  ;;  %1098 = vmatprep.mubr.msk.f32.mxu1 %vm1184_vm0, %v1183_v0  ;;  %vm56_vm3 = vcmask 1043459   ;;  %vm59_vm4 = vcmask 1044484   ;;  %vm62_vm5 = vcmask 1045509   ;;  %vm65_vm6 = vcmask 1046534  }
   0x2   :  { %1095 = vmatpush3.msra.mxu1 %v1225_v1  ;;  %v1238_v3 = vld [vmem:[%s1442_s0 + $0x2] sm:$0x3]  ;;  %v1243_v4 = vld [vmem:[%s1442_s0 + $0x4] sm:$0x3]  ;;  %v1248_v5 = vld [vmem:[%s1442_s0 + $0x6] sm:$0x3]  ;;  %1106 = vmatprep.subr.mxu0 %v1183_v0 }
   0x3   :  { %1096 = vmatprep.subr.mxu1 %v1183_v0  ;;  %v1255_v6 = vld [vmem:[%s1442_s0] sm:$0x3]  ;;  %v1260_v7 = vld [vmem:[%s1442_s0 + $0x8] sm:$0x3]  ;;  %v1265_v8 = vld [vmem:[%s1442_s0 + $0xa] sm:$0x3]  ;;  %1108 = vmatprep.mubr.msk.f32.mxu0 %vm1184_vm0, %v1183_v0 }
   0x4   :  { %1097 = vmatpush3.msra.mxu1 %v1230_v2  ;;  %v1273_v9 = vld [vmem:[%s1442_s0 + $0xc] sm:$0x3]  ;;  %v49_v10 = vrot.slane %v1238_v3, 7  ;;  %v52_v11 = vrot.slane %v1243_v4, 6  ;;  %v55_v12 = vrot.slane %v1248_v5, 5  ;;  %v58_v14 = vrot.slane %v1260_v7, 4 }
   0x5   :  { %v1281_v13 = vld [vmem:[%s1442_s0 + $0xe] sm:$0x3]  ;;  %1101 = vmatprep.subr.mxu1 %v1183_v0  ;;  %v61_v16 = vrot.slane %v1265_v8, 3  ;;  %v64_v18 = vrot.slane %v1273_v9, 2  ;;  %vm68_vm7 = vcmask 1047559   ;;  %vm70_vm8 = vcmask 130048  }
   0x6   :  { %v51_v15 = vsel %vm50_vm1, %v49_v10, %v1255_v6  ;;  %v67_v20 = vrot.slane %v1281_v13, 1  ;;  %vm216_vm9 = vcmask 64512   ;;  %v1310_v35 = vld [vmem:[%s1443_s2 + $0x8] sm:$0xff]  ;;  %v1315_v36 = vld [vmem:[%s1443_s2] sm:$0xff]  ;;  %v534_v40 = vrot.slane %v1255_v6, 1  ;;  %v1342_v54 = vld [vmem:[%s1444_s4 + $0x18] sm:$0xff] }
   0x7   :  { %v54_v17 = vsel %vm53_vm2, %v52_v11, %v51_v15  ;;  %v536_v41 = vrot.slane %v1243_v4, 7  ;;  %v538_v42 = vrot.slane %v1248_v5, 6  ;;  %v540_v43 = vrot.slane %v1260_v7, 5  ;;  %v38_v57 = vld [vmem:[%s1444_s4 + $0x10] sm:$0xff]  ;;  %v37_v58 = vld [vmem:[%s1444_s4 + $0x8] sm:$0xff]  ;;  %v36_v59 = vld [vmem:[%s1444_s4] sm:$0xff] }
   0x8   :  { %v57_v19 = vsel %vm56_vm3, %v55_v12, %v54_v17  ;;  %v542_v44 = vrot.slane %v1265_v8, 4  ;;  %v535_v45 = vsel %vm50_vm1, %v1238_v3, %v534_v40  ;;  %v544_v46 = vrot.slane %v1273_v9, 3  ;;  %v1054_v60 = vld [vmem:[%s1445_s3] ss:$0 sm:$0xff] }
   0x9   :  { %v60_v21 = vsel %vm59_vm4, %v58_v14, %v57_v19  ;;  %v537_v47 = vsel %vm53_vm2, %v536_v41, %v535_v45  ;;  %v546_v48 = vrot.slane %v1281_v13, 2  ;;  %vm388_vm10 = vcmask 261120   ;;  %v1056_v12 = vld [vmem:[%s1446_s5] ss:$0 sm:$0xff] }
   0xa   :  { %v63_v22 = vsel %vm62_vm5, %v61_v16, %v60_v21  ;;  %v539_v49 = vsel %vm56_vm3, %v538_v42, %v537_v47  ;;  %vm462_vm11 = vcmask 48128   ;;  %v481_v45 = vlaneseq }
   0xb   :  { %v66_v23 = vsel %vm65_vm6, %v64_v18, %v63_v22  ;;  %v541_v50 = vsel %vm59_vm4, %v540_v43, %v539_v49  ;;  %v1185_v43 = vmov 1966171168   ;;  %vm1028_vm12 = vcmask 1040384  }
   0xc   :  { %v69_v24 = vsel %vm68_vm7, %v67_v20, %v66_v23  ;;  %v543_v51 = vsel %vm62_vm5, %v542_v44, %v541_v50  ;;  %v479_v44 = vunpack.c.l.s4 %v1185_v43  ;;  %vm1037_vm13 = vcmask 41984  }
   0xd   :  { %1099 = vmatmul.mubr.msk.f32.vlgmr.msra.gmra.mxu1 %vm70_vm8, %v69_v24  ;;  %1107 = vmatpush3.msra.mxu0 %v69_v24  ;;  %v545_v52 = vsel %vm65_vm6, %v544_v46, %v543_v51 }
   0xe   :  { %1102 = vmatpush3.xpose.msk.msra.mxu1 %vm70_vm8, %v69_v24  ;;  %1103 = vmatprep.mubr.msk.f32.mxu1 %vm1184_vm0, %v1183_v0  ;;  %v547_v53 = vsel %vm68_vm7, %v546_v48, %v545_v52  ;;  %v480_v47 = vunpack.c.0.s8 %v479_v44  ;;  %v482_v48 = vshrl.u32 %v481_v45, 7 }
   0xf   :  { %1111 = vmatprep.subr.mxu1 %v1183_v0  ;;  %1118 = vmatprep.subr.mxu0 %v1183_v0 }
  0x10   :  { %v483_v50 = vsub.s32 %v480_v47, %v482_v48 }
  0xcd   :  { %v139_v25 = vpop.f32.mrf.mxu1 }
  0xce   :  { %1104 = vmatmul.mubr.msk.f32.vlgmr.msra.gmra.mxu1 %vm70_vm8, %v139_v25 }
  0xcf   :  { %v1100_v26 = vpop.f32.mrf.mxu1  ;;  %1115 = vmatprep.mubr.msk.f32.mxu1 %vm1184_vm0, %v1183_v0  ;;  %1112 = vmatpush3.msra.mxu1 %v1310_v35 }
  0xd0   :  { %1113 = vmatprep.subr.mxu1 %v1183_v0 }
  0xd1   :  { %1114 = vmatpush3.msra.mxu1 %v1315_v36 }
  0xd2   :  { %1129 = vmatprep.subr.mxu1 %v1183_v0 }
 0x18e   :  { %v212_v27 = vpop.f32.mrf.mxu1 }
 0x18f   :  { %v217_v28 = vsel %vm216_vm9, %v212_v27, -inf }
 0x190   :  { %218 = vmax.xlane.f32.xlu0 %v217_v28  ;;  %v1105_v29 = vpop.f32.mrf.mxu1 }
 0x219   :  { %v219_v30 = vpop.xlane.xlu0 %218 }
 0x21a   :  { %v220_v31 = vsub.f32 %v212_v27, %v219_v30 }
 0x21c   :  { %v221_v32 = vmul.f32 1.442695, %v220_v31 }
 0x21e   :  { %1167 = vpow2.f32 %v221_v32 }
 0x22b   :  { %v1168_v33 = vpop.eup %1167 }
 0x22c   :  { %v223_v34 = vsel %vm216_vm9, %v1168_v33, 0.0 }
 0x22d   :  { %224 = vadd.xlane.f32.xlu0 %v223_v34 }
 0x2b6   :  { %v225_v37 = vpop.xlane.xlu0 %224 }
 0x2b7   :  { %1169 = vrcp.f32 %v225_v37 }
 0x2c4   :  { %v1170_v38 = vpop.eup %1169 }
 0x2c5   :  { %v227_v39 = vmul.f32 %v1170_v38, %v1168_v33 }
 0x2c7   :  { %1109 = vmatmul.mubr.msk.f32.vlgmr.msra.gmra.mxu0 %vm216_vm9, %v227_v39 }
 0x2c8   :  { %1126 = vmatprep.mubr.msk.f32.mxu0 %vm1184_vm0, %v1183_v0  ;;  %1119 = vmatpush3.msra.mxu0 %v1342_v54 }
 0x2c9   :  { %1120 = vmatprep.subr.mxu0 %v1183_v0 }
 0x2ca   :  { %1121 = vmatpush3.msra.mxu0 %v38_v57 }
 0x2cb   :  { %1122 = vmatprep.subr.mxu0 %v1183_v0 }
 0x2cc   :  { %1123 = vmatpush3.msra.mxu0 %v37_v58 }
 0x2cd   :  { %1124 = vmatprep.subr.mxu0 %v1183_v0 }
 0x2ce   :  { %1125 = vmatpush3.msra.mxu0 %v36_v59 }
 0x2cf   :  { %1141 = vmatprep.subr.mxu0 %v1183_v0 }
 0x387   :  { %v298_v55 = vpop.f32.mrf.mxu0 }
 0x388   :  { %1116 = vmatmul.mubr.msk.f32.vlgmr.msra.gmra.mxu1 %vm70_vm8, %v298_v55 }
 0x389   :  { %1130 = vmatpush3.msra.mxu1 %v1225_v1  ;;  %v1110_v56 = vpop.f32.mrf.mxu0  ;;  %1133 = vmatprep.mubr.msk.f32.mxu1 %vm1184_vm0, %v1183_v0 }
 0x38a   :  { %1131 = vmatprep.subr.mxu1 %v1183_v0 }
 0x38b   :  { %1132 = vmatpush3.msra.mxu1 %v1230_v2 }
 0x38c   :  { %1134 = vmatmul.mubr.msk.f32.vlgmr.msra.gmra.mxu1 %vm70_vm8, %v547_v53  ;;  %1136 = vmatprep.subr.mxu1 %v1183_v0 }
 0x38d   :  { %1137 = vmatpush3.xpose.msk.msra.mxu1 %vm70_vm8, %v547_v53  ;;  %1138 = vmatprep.mubr.msk.f32.mxu1 %vm1184_vm0, %v1183_v0 }
 0x38e   :  { %1146 = vmatprep.subr.mxu1 %v1183_v0 }
 0x448   :  { %v377_v61 = vpop.f32.mrf.mxu1 }
 0x449   :  { %v378_v62 = vadd.f32 %v1054_v60, %v377_v61 }
 0x44a   :  { %v1117_v63 = vpop.f32.mrf.mxu1 }
 0x44b   :  { %v381_v1 = vmax.f32 %v378_v62, 0.0 }
 0x44c   :  { %v616_v2 = vpop.f32.mrf.mxu1 }
 0x44d   :  { %1127 = vmatmul.mubr.msk.f32.vlgmr.msra.gmra.mxu0 %vm388_vm10, %v381_v1  ;;  %1139 = vmatmul.mubr.msk.f32.vlgmr.msra.gmra.mxu1 %vm70_vm8, %v616_v2  ;;  %v990_v1 = vsub.s32 0, %v482_v48 }
 0x44e   :  { %v1135_v3 = vpop.f32.mrf.mxu1  ;;  %1142 = vmatpush3.msra.mxu0 %v547_v53  ;;  %1143 = vmatprep.mubr.msk.f32.mxu0 %vm1184_vm0, %v1183_v0 }
 0x44f   :  { %1147 = vmatpush3.msra.mxu1 %v1310_v35  ;;  %1150 = vmatprep.mubr.msk.f32.mxu1 %vm1184_vm0, %v1183_v0 }
 0x450   :  { %1148 = vmatprep.subr.mxu1 %v1183_v0  ;;  %1153 = vmatprep.subr.mxu0 %v1183_v0 }
 0x451   :  { %1149 = vmatpush3.msra.mxu1 %v1315_v36 }
 0x50d   :  { %v458_v4 = vpop.f32.mrf.mxu0  ;;  %v689_v5 = vpop.f32.mrf.mxu1 }
 0x50e   :  { %v693_v6 = vsel %vm216_vm9, %v689_v5, -inf  ;;  %v459_v14 = vadd.f32 %v1056_v12, %v458_v4 }
 0x50f   :  { %v1128_v7 = vpop.f32.mrf.mxu0  ;;  %694 = vmax.xlane.f32.xlu1 %v693_v6  ;;  %v1140_v8 = vpop.f32.mrf.mxu1 }
 0x510   :  { %v463_v16 = vsel %vm462_vm11, %v459_v14, -inf }
 0x598   :  { %v695_v9 = vpop.xlane.xlu1 %694 }
 0x599   :  { %v696_v10 = vsub.f32 %v689_v5, %v695_v9 }
 0x59b   :  { %v697_v11 = vmul.f32 1.442695, %v696_v10 }
 0x59d   :  { %1171 = vpow2.f32 %v697_v11 }
 0x5aa   :  { %v1172_v13 = vpop.eup %1171 }
 0x5ab   :  { %v699_v15 = vsel %vm216_vm9, %v1172_v13, 0.0 }
 0x5ac   :  { %700 = vadd.xlane.f32.xlu1 %v699_v15 }
 0x5b0   :  { %464 = vmax.xlane.f32.xlu1 %v463_v16 }
 0x635   :  { %v701_v17 = vpop.xlane.xlu1 %700 }
 0x636   :  { %1173 = vrcp.f32 %v701_v17 }
 0x639   :  { %v465_v18 = vpop.xlane.xlu1 %464 }
 0x63a   :  { %v466_v19 = vsub.f32 %v459_v14, %v465_v18 }
 0x63c   :  { %v467_v20 = vmul.f32 1.442695, %v466_v19 }
 0x63e   :  { %1175 = vpow2.f32 %v467_v20 }
 0x643   :  { %v1174_v21 = vpop.eup %1173 }
 0x644   :  { %v703_v22 = vmul.f32 %v1174_v21, %v1172_v13 }
 0x646   :  { %1144 = vmatmul.mubr.msk.f32.vlgmr.msra.gmra.mxu0 %vm216_vm9, %v703_v22 }
 0x647   :  { %1154 = vmatpush3.msra.mxu0 %v1342_v54  ;;  %1161 = vmatprep.mubr.msk.f32.mxu0 %vm1184_vm0, %v1183_v0 }
 0x648   :  { %1155 = vmatprep.subr.mxu0 %v1183_v0 }
 0x649   :  { %1156 = vmatpush3.msra.mxu0 %v38_v57 }
 0x64a   :  { %1157 = vmatprep.subr.mxu0 %v1183_v0 }
 0x64b   :  { %v1176_v23 = vpop.eup %1175  ;;  %1158 = vmatpush3.msra.mxu0 %v37_v58 }
 0x64c   :  { %v469_v24 = vsel %vm462_vm11, %v1176_v23, 0.0  ;;  %1159 = vmatprep.subr.mxu0 %v1183_v0 }
 0x64d   :  { %470 = vadd.xlane.f32.xlu1 %v469_v24  ;;  %1160 = vmatpush3.msra.mxu0 %v36_v59 }
 0x6d6   :  { %v471_v39 = vpop.xlane.xlu1 %470 }
 0x706   :  { %v774_v25 = vpop.f32.mrf.mxu0 }
 0x707   :  { %1151 = vmatmul.mubr.msk.f32.vlgmr.msra.gmra.mxu1 %vm70_vm8, %v774_v25 }
 0x708   :  { %v1145_v26 = vpop.f32.mrf.mxu0 }
 0x7c7   :  { %v847_v27 = vpop.f32.mrf.mxu1 }
 0x7c8   :  { %v848_v28 = vadd.f32 %v1054_v60, %v847_v27 }
 0x7c9   :  { %v1152_v29 = vpop.f32.mrf.mxu1 }
 0x7ca   :  { %v851_v30 = vmax.f32 %v848_v28, 0.0 }
 0x7cc   :  { %1162 = vmatmul.mubr.msk.f32.vlgmr.msra.gmra.mxu0 %vm388_vm10, %v851_v30 }
 0x88c   :  { %v921_v31 = vpop.f32.mrf.mxu0 }
 0x88d   :  { %v922_v32 = vadd.f32 %v1056_v12, %v921_v31 }
 0x88e   :  { %v1163_v33 = vpop.f32.mrf.mxu0 }
 0x88f   :  { %v925_v34 = vsel %vm462_vm11, %v922_v32, -inf }
 0x890   :  { %926 = vmax.xlane.f32.xlu0 %v925_v34 }
 0x919   :  { %v927_v35 = vpop.xlane.xlu0 %926 }
 0x91a   :  { %v928_v0 = vsub.f32 %v922_v32, %v927_v35 }
 0x91c   :  { %v929_v36 = vmul.f32 1.442695, %v928_v0 }
 0x91e   :  { %1177 = vpow2.f32 %v929_v36 }
 0x91f   :  { %1179 = vlog2.f32 %v471_v39 }
 0x92b   :  { %v1178_v37 = vpop.eup %1177 }
 0x92c   :  { %v931_v38 = vsel %vm462_vm11, %v1178_v37, 0.0  ;;  %v1180_v40 = vpop.eup %1179 }
 0x92d   :  { %932 = vadd.xlane.f32.xlu0 %v931_v38  ;;  %v473_v42 = vmul.f32 0.6931472, %v1180_v40 }
 0x92f   :  { %v474_v46 = vadd.f32 %v473_v42, %v465_v18 }
 0x931   :  { %v475_v49 = vsub.f32 %v459_v14, %v474_v46 }
 0x933   :  { %v477_v52 = vcombine.high %v475_v49, %v475_v49  ;;  %v484_v54 = vrot.slane %v475_v49, %v483_v50 }
 0x935   :  { %v491_v56 = vrot.slane %v477_v52, %v483_v50  ;;  %v492_v58 = vcombine.high %v484_v54, %v484_v54  ;;  %v500_v59 = vrot.slane %v484_v54, %v483_v50 }
 0x937   :  { %v493_v62 = vcombine.high %v491_v56, %v491_v56  ;;  %v507_v63 = vrot.slane %v491_v56, %v483_v50  ;;  %v514_v5 = vrot.slane %v492_v58, %v483_v50  ;;  %v522_v6 = vcombine.high %v500_v59, %v500_v59 }
 0x939   :  { %v521_v11 = vrot.slane %v493_v62, %v483_v50  ;;  %v523_v12 = vcombine.high %v507_v63, %v507_v63  ;;  %v524_v18 = vcombine.high %v514_v5, %v514_v5 }
 0x93b   :  { %v525_v26 = vcombine.high %v521_v11, %v521_v11 }
 0x9b6   :  { %v933_v41 = vpop.xlane.xlu0 %932 }
 0x9b7   :  { %1181 = vlog2.f32 %v933_v41 }
 0x9c4   :  { %v1182_v51 = vpop.eup %1181 }
 0x9c5   :  { %v935_v53 = vmul.f32 0.6931472, %v1182_v51 }
 0x9c7   :  { %v936_v55 = vadd.f32 %v935_v53, %v927_v35 }
 0x9c9   :  { %v937_v57 = vsub.f32 %v922_v32, %v936_v55 }
 0x9cb   :  { %v939_v60 = vcombine.high %v937_v57, %v937_v57  ;;  %v946_v61 = vrot.slane %v937_v57, %v483_v50 }
 0x9cd   :  { %v953_v2 = vrot.slane %v939_v60, %v483_v50  ;;  %v954_v3 = vcombine.high %v946_v61, %v946_v61  ;;  %v962_v4 = vrot.slane %v946_v61, %v483_v50 }
 0x9cf   :  { %v955_v7 = vcombine.high %v953_v2, %v953_v2  ;;  %v969_v8 = vrot.slane %v953_v2, %v483_v50  ;;  %v976_v9 = vrot.slane %v954_v3, %v483_v50  ;;  %v984_v10 = vcombine.high %v962_v4, %v962_v4 }
 0x9d0   :  { %v991_v13 = vrot.slane %v962_v4, %v990_v1 }
 0x9d1   :  { %v983_v14 = vrot.slane %v955_v7, %v483_v50  ;;  %v985_v15 = vcombine.high %v969_v8, %v969_v8  ;;  %v986_v16 = vcombine.high %v976_v9, %v976_v9  ;;  %v995_v17 = vrot.slane %v976_v9, %v990_v1 }
 0x9d2   :  { %v999_v19 = vrot.slane %v984_v10, %v990_v1  ;;  %v1007_v20 = vrot.slane %v969_v8, %v990_v1  ;;  %v1029_v21 = vsel %vm1028_vm12, %v500_v59, %v991_v13 }
 0x9d3   :  { %v987_v22 = vcombine.high %v983_v14, %v983_v14  ;;  %v1003_v23 = vrot.slane %v986_v16, %v990_v1  ;;  %v1011_v24 = vrot.slane %v983_v14, %v990_v1  ;;  %v1015_v25 = vrot.slane %v985_v15, %v990_v1  ;;  %1038 = vst.msk [vmem:[%s1447_s6] sm:$0x3] %vm1037_vm13, %v1029_v21 }
 0x9d4   :  { %v1030_v27 = vsel %vm1028_vm12, %v514_v5, %v995_v17  ;;  %v1031_v28 = vsel %vm1028_vm12, %v522_v6, %v999_v19  ;;  %v1033_v29 = vsel %vm1028_vm12, %v507_v63, %v1007_v20 }
 0x9d5   :  { %v1019_v30 = vrot.slane %v987_v22, %v990_v1  ;;  %v1032_v31 = vsel %vm1028_vm12, %v524_v18, %v1003_v23  ;;  %v1034_v32 = vsel %vm1028_vm12, %v521_v11, %v1011_v24  ;;  %v1035_v33 = vsel %vm1028_vm12, %v523_v12, %v1015_v25  ;;  %1039 = vst.msk [vmem:[%s1447_s6 + $0x2] sm:$0x3] %vm1037_vm13, %v1030_v27 }
 0x9d6   :  { %1040 = vst.msk [vmem:[%s1447_s6 + $0x4] sm:$0x3] %vm1037_vm13, %v1031_v28  ;;  %1042 = vst.msk [vmem:[%s1447_s6 + $0x8] sm:$0x3] %vm1037_vm13, %v1033_v29 }
 0x9d7   :  { %1041 = vst.msk [vmem:[%s1447_s6 + $0x6] sm:$0x3] %vm1037_vm13, %v1032_v31  ;;  %1043 = vst.msk [vmem:[%s1447_s6 + $0xa] sm:$0x3] %vm1037_vm13, %v1034_v32  ;;  %v1036_v34 = vsel %vm1028_vm12, %v525_v26, %v1019_v30 }
 0x9d8   :  { %1044 = vst.msk [vmem:[%s1447_s6 + $0xc] sm:$0x3] %vm1037_vm13, %v1035_v33  ;;  %1045 = vst.msk [vmem:[%s1447_s6 + $0xe] sm:$0x3] %vm1037_vm13, %v1036_v34 }

// kernel: birnn_forward.3
= control target key start
LH: loop header
LB: loop body
LE: loop exit
PB: predicated region body
PF: predicated region fallthrough
CT: control target
= control target key end

     0   :  { %s2937_s17 = smov 0   ;;  %s2939_s18 = smov 0   ;;  %s3327_s0 = inlined_call_operand.vmem [shape: f32[2,8,2,16], index: 0, kind: input, shape index: {}]   ;;  %s3328_s1 = inlined_call_operand.vmem [shape: f32[2,8,2,2], index: 1, kind: input, shape index: {}]   ;;  %s3329_s2 = inlined_call_operand.vmem [shape: f32[2,3,26,12], index: 2, kind: input, shape index: {}]   ;;  %s3330_s3 = inlined_call_operand.vmem [shape: f32[2,3,12,12], index: 3, kind: input, shape index: {}]   ;;  %s3331_s4 = inlined_call_operand.vmem [shape: f32[2,3,1,12], index: 4, kind: input, shape index: {}]   ;;  %s3332_s5 = inlined_call_operand.vmem [shape: f32[2,3,1,12], index: 5, kind: input, shape index: {}]   ;;  %s3333_s6 = inlined_call_operand.vmem [shape: f32[2,3,28,10], index: 6, kind: input, shape index: {}]   ;;  %s3334_s7 = inlined_call_operand.vmem [shape: f32[2,3,10,10], index: 7, kind: input, shape index: {}]   ;;  %s3335_s8 = inlined_call_operand.vmem [shape: f32[2,3,1,10], index: 8, kind: input, shape index: {}]   ;;  %s3336_s9 = inlined_call_operand.vmem [shape: f32[2,3,1,10], index: 9, kind: input, shape index: {}]   ;;  %s3337_s10 = inlined_call_operand.vmem [shape: f32[2,16,12], index: 10, kind: input, shape index: {}]   ;;  %s3338_s11 = inlined_call_operand.vmem [shape: f32[2,8,2,10], index: 11, kind: output, shape index: {}]  }
   0x1   :  { %3343 = sst [smem:[#allocation11_spill]] %s3328_s1  ;;  %s2941_s19 = smov 0  }
   0x2   :  { %3344 = sst [smem:[#allocation12_spill]] %s3329_s2  ;;  %s2943_s20 = smov 0  }
   0x3   :  { %3345 = sst [smem:[#allocation13_spill]] %s3330_s3  ;;  %s2945_s21 = smov 0  }
   0x4   :  { %3346 = sst [smem:[#allocation14_spill]] %s3331_s4 }
   0x5   :  { %3347 = sst [smem:[#allocation15_spill]] %s3333_s6 }
   0x6 LB: > { %3348 = sst [smem:[#allocation5_spill]] %s2861_s19  ;;  %s30_s22 = sadd.s32 1, %s2861_s19  ;;  %s2869_s21 = sphi %s2945_s21, %s21_s21   ;;  %s2865_s20 = sphi %s2943_s20, %s3365_s20   ;;  %s2861_s19 = sphi %s2941_s19, %s3364_s19   ;;  %s2857_s18 = sphi %s2939_s18, %s3363_s18   ;;  %s2853_s17 = sphi %s2937_s17, %s3362_s17  }
   0x7   : > { %3349 = sst [smem:[#allocation6_spill]] %s2865_s20  ;;  %s33_s23 = sadd.s32 1, %s2865_s20 }
   0x8   : > { %3350 = sst [smem:[#allocation7_spill]] %s2869_s21  ;;  %p31_p0 = scmp.ge.s32.totalorder %s30_s22, 8 }
   0x9   : > { %p2482_p1 = scmp.ge.s32.totalorder %s2869_s21, 1  ;;  %p457_p2 = scmp.lt.s32.totalorder %s2869_s21, 17 }
   0xa   : > { %s3367_s22 = smov (%p31_p0, %s30_s22), 0  ;;  %s3369_s23 = smov (!%p31_p0, %s33_s23), %s2865_s20 }
   0xb   : > { %3351 = sst [smem:[#allocation8_spill]] %s3367_s22  ;;  %p458_p3 = pnand %p2482_p1, %p457_p2 }
   0xc   : > { %p35_p4 = scmp.ge.s32.totalorder %s3369_s23, 2 }
   0xd   : > { %461 = sbr.rel (%p458_p3) target bundleno = 1252 (0x4e4), region = 64 }
   0xe   : > { %s3371_s23 = smov (%p35_p4, %s3369_s23), 0 }
   0xf   : > { %3352 = sst [smem:[#allocation9_spill]] %s3371_s23 }
  0x12   : > { %p552_p5 = scmp.lt.s32.totalorder %s2857_s18, 1  ;;  %p554_p6 = scmp.lt.s32.totalorder %s2853_s17, 7 }
  0x13   : > { %s3353_s2 = sld [smem:[#allocation12_spill]]  ;;  %p2495_p7 = scmp.ne.s32.totalorder %s2853_s17, 0 }
  0x14   : > { %s3373_s18 = smov (!%p552_p5, %s2857_s18), 1  ;;  %s3355_s1 = sld [smem:[#allocation11_spill]] }
  0x15   : > { %s555_s24 = scalar_select %p554_p6, %s2853_s17, 7 }
  0x16   : > { %s2483_s25 = sshll.u32 %s3373_s18, 3  ;;  %s2745_s26 = smul.u32 96, %s3373_s18 }
  0x17   : > { %s557_s27 = sadd.s32 %s2483_s25, %s555_s24  ;;  %s2746_s28 = smul.u32 48, %s3373_s18 }
  0x18   : > { %s2971_s29 = sshll.u32 %s557_s27, 1  ;;  %s3356_s3 = sld [smem:[#allocation13_spill]] }
  0x19   : > { %s2976_s13 = scalar_lea.vmem %s3353_s2, %s2745_s26  ;;  %s2747_s19 = smul.u32 3, %s3373_s18 }
  0x1a   : > { %3354 = sst [smem:[#allocation10_spill]] %s2976_s13  ;;  %s567_s20 = scalar_lea.vmem %s3355_s1, %s2971_s29 }
  0x1b   : > { %s3357_s6 = sld [smem:[#allocation15_spill]]  ;;  %s2999_s14 = scalar_lea.vmem %s3334_s7, %s2746_s28 }
  0x1c   : > { %s3358_s4 = sld [smem:[#allocation14_spill]]  ;;  %s3009_s25 = scalar_lea.vmem %s3332_s5, %s2747_s19 }
  0x1d   : > { %s3019_s2 = scalar_lea.vmem %s3336_s9, %s2747_s19  ;;  %s616_s15 = scalar_lea.vmem %s3338_s11, %s2971_s29 }
  0x1e   : > { %s2989_s27 = scalar_lea.vmem %s3356_s3, %s2746_s28  ;;  %s2548_s28 = sshll.u32 %s3373_s18, 4 }
  0x1f   : > { %s3028_s23 = scalar_lea.vmem %s3337_s10, %s2548_s28  ;;  %620 = sbr.rel (%p2495_p7) target bundleno = 43 (0x2b), region = 68 }
  0x21   : > { %s2994_s21 = scalar_lea.vmem %s3357_s6, %s2745_s26  ;;  %s3014_s26 = scalar_lea.vmem %s3335_s8, %s2747_s19 }
  0x22   : > { %s3004_s22 = scalar_lea.vmem %s3358_s4, %s2747_s19 }
  0x24   : > { %vm621_vm0 = vcmask 91136   ;;  %vm631_vm1 = vcmask 74752   ;;  %v2871_v0 = vmov 0.0  }
  0x25   : > { %622 = vst.msk [vmem:[#allocation2] sm:$0x3] %vm621_vm0, %v2871_v0  ;;  %623 = vst.msk [vmem:[#allocation2 + $0x2] sm:$0x3] %vm621_vm0, %v2871_v0 }
  0x26   : > { %624 = vst.msk [vmem:[#allocation2 + $0x4] sm:$0x3] %vm621_vm0, %v2871_v0  ;;  %625 = vst.msk [vmem:[#allocation2 + $0x6] sm:$0x3] %vm621_vm0, %v2871_v0 }
  0x27   : > { %626 = vst.msk [vmem:[#allocation2 + $0x8] sm:$0x3] %vm621_vm0, %v2871_v0  ;;  %627 = vst.msk [vmem:[#allocation2 + $0xa] sm:$0x3] %vm621_vm0, %v2871_v0 }
  0x28   : > { %628 = vst.msk [vmem:[#allocation2 + $0xc] sm:$0x3] %vm621_vm0, %v2871_v0  ;;  %629 = vst.msk [vmem:[#allocation2 + $0xe] sm:$0x3] %vm621_vm0, %v2871_v0 }
  0x29   : > { %630 = vst.msk [vmem:[#allocation3] sm:$0x3] %vm621_vm0, %v2871_v0 }
  0x2a   : > { %632 = vst.msk [vmem:[#allocation4] sm:$0x3] %vm631_vm1, %v2871_v0  ;;  %633 = vst.msk [vmem:[#allocation4 + $0x2] sm:$0x3] %vm631_vm1, %v2871_v0 }
  0x2b PF: > { %v3031_v1 = vld [vmem:[%s567_s20] sm:$0x3]  ;;  %s3359_s1 = sld [smem:[#allocation10_spill]]  ;;  %v2872_v2 = vmov 0   ;;  %v2873_v3 = vmov 1   ;;  %vm726_vm2 = vcmask 1041408   ;;  %s3360_s18 = scalar_lea.vmem %s3327_s0, %s2971_s29 }
  0x2c   : > { %2794 = vset.pattern.permute.xlu0 %v2872_v2  ;;  %2796 = vset.pattern.permute.xlu1 %v2872_v2  ;;  %v2874_v6 = vmov 0.0   ;;  %vm2875_vm3 = vmmov 0   ;;  %s2876_s3 = smov 16   ;;  %vm714_vm4 = vcmask 130048   ;;  %v3077_v20 = vld [vmem:[%s3360_s18] sm:$0x3] }
  0x2d   : > { %699 = vperm.xlu0 %2794, %v3031_v1   ;;  %2609 = vmatprep.subr.mxu0 %v2874_v6  ;;  %vm722_vm5 = vcmask 211968   ;;  %v660_v23 = vld [vmem:[%s2989_s27 + $0x8] sm:$0xf]  ;;  %vm968_vm6 = vcmask 1043456   ;;  %v659_v26 = vld [vmem:[%s2989_s27] sm:$0xff]  ;;  %vm964_vm7 = vcmask 97280  }
  0x2e   : > { %2620 = vmatprep.subr.mxu1 %v2874_v6  ;;  %2617 = vmatprep.mubr.msk.f32.mxu0 %vm2875_vm3, %v2874_v6  ;;  %v662_v29 = vld [vmem:[%s2989_s27 + $0x18] sm:$0xf]  ;;  %v661_v31 = vld [vmem:[%s2989_s27 + $0x10] sm:$0xff]  ;;  %v696_v32 = vld [vmem:[%s3028_s23 + $0x8] sm:$0xff]  ;;  %vm1302_vm8 = vcmask 91136   ;;  %s2545_s19 = sshll.u32 %s2853_s17, 1 }
  0x2f   : > { %2628 = vmatprep.mubr.msk.f32.mxu1 %vm2875_vm3, %v2874_v6  ;;  %v664_v33 = vld [vmem:[%s2989_s27 + $0x28] sm:$0xf]  ;;  %v695_v34 = vld [vmem:[%s3028_s23] sm:$0xff]  ;;  %s2260_s20 = scalar_lea.vmem [#allocation2], %s2545_s19  ;;  %vm1373_vm9 = vcmask 1041409   ;;  %vm1375_vm10 = vcmask 1042434  }
  0x30   : > { %v3092_v28 = vld [vmem:[#allocation3] sm:$0x3]  ;;  %v663_v35 = vld [vmem:[%s2989_s27 + $0x20] sm:$0xff]  ;;  %vm1377_vm11 = vcmask 1043459   ;;  %vm1379_vm12 = vcmask 1044484   ;;  %vm1381_vm13 = vcmask 1045509  }
  0x31   : > { %2795 = vset.pattern.permute.xlu0 %v2873_v3  ;;  %v650_v4 = vld [vmem:[%s3359_s1 + $0x18] sm:$0x3]  ;;  %v649_v7 = vld [vmem:[%s3359_s1 + $0x10] sm:$0xff]  ;;  %v648_v9 = vld [vmem:[%s3359_s1 + $0x8] sm:$0xff]  ;;  %vm1383_vm14 = vcmask 1046534   ;;  %vm1385_vm15 = vcmask 1047559  }
  0x32   : > { %705 = vperm.xlu0 %2795, %v3031_v1   ;;  %v654_v5 = vld [vmem:[%s3359_s1 + $0x38] sm:$0x3]  ;;  %v653_v8 = vld [vmem:[%s3359_s1 + $0x30] sm:$0xff]  ;;  %2610 = vmatpush3.msk.msra.mxu0 %vm726_vm2, %v650_v4  ;;  %v652_v10 = vld [vmem:[%s3359_s1 + $0x28] sm:$0xff]  ;;  %vm1389_vm1 = vcmask 15360   ;;  %p1488_p8 = scmp.gt.s32.totalorder %s2853_s17, 0 }
  0x33   : > { %2621 = vmatpush3.msk.msra.mxu1 %vm726_vm2, %v654_v5  ;;  %2611 = vmatprep.subr.mxu0 %v2874_v6  ;;  %v647_v11 = vld [vmem:[%s3359_s1] sm:$0xff]  ;;  %v3061_v14 = vld [vmem:[#allocation4] sm:$0x3]  ;;  %v3063_v15 = vld [vmem:[#allocation4 + $0x2] sm:$0x3] }
  0x34   : > { %2622 = vmatprep.subr.mxu1 %v2874_v6  ;;  %2612 = vmatpush3.msra.mxu0 %v649_v7  ;;  %v651_v12 = vld [vmem:[%s3359_s1 + $0x20] sm:$0xff]  ;;  %v658_v22 = vld [vmem:[%s3359_s1 + $0x58] sm:$0x3]  ;;  %v657_v25 = vld [vmem:[%s3359_s1 + $0x50] sm:$0xff]  ;;  %s1489_s27 = scalar_select %p1488_p8, 1, 0 }
  0x35   : > { %2623 = vmatpush3.msra.mxu1 %v653_v8  ;;  %2613 = vmatprep.subr.mxu0 %v2874_v6  ;;  %v656_v27 = vld [vmem:[%s3359_s1 + $0x48] sm:$0xff]  ;;  %v655_v30 = vld [vmem:[%s3359_s1 + $0x40] sm:$0xff] }
  0x36   : > { %2624 = vmatprep.subr.mxu1 %v2874_v6  ;;  %2614 = vmatpush3.msra.mxu0 %v648_v9  ;;  %v2496_v40 = vld [vmem:[%s3004_s22] ss:$0 sm:$0xff]  ;;  %v2508_v48 = vld [vmem:[%s3009_s25 + $0x1] ss:$0 sm:$0xff]  ;;  %v3140_v56 = vld [vmem:[#allocation2 + $0x2] sm:$0x3] }
  0x37   : > { %2625 = vmatpush3.msra.mxu1 %v652_v10  ;;  %2615 = vmatprep.subr.mxu0 %v2874_v6  ;;  %v2505_v41 = vld [vmem:[%s3009_s25] ss:$0 sm:$0xff]  ;;  %v2499_v49 = vld [vmem:[%s3004_s22 + $0x1] ss:$0 sm:$0xff]  ;;  %v3144_v60 = vld [vmem:[#allocation2 + $0x6] sm:$0x3] }
  0x38   : > { %2626 = vmatprep.subr.mxu1 %v2874_v6  ;;  %2616 = vmatpush3.msra.mxu0 %v647_v11  ;;  %v3142_v57 = vld [vmem:[#allocation2] sm:$0x3]  ;;  %v3146_v61 = vld [vmem:[#allocation2 + $0x4] sm:$0x3]  ;;  %v3154_v9 = vld [vmem:[#allocation2 + $0xa] sm:$0x3] }
  0x39   : > { %2627 = vmatpush3.msra.mxu1 %v651_v12  ;;  %2631 = vmatprep.subr.mxu0 %v2874_v6  ;;  %v3156_v10 = vld [vmem:[#allocation2 + $0x8] sm:$0x3] }
  0x3a   : > { %2642 = vmatprep.subr.mxu1 %v2874_v6 }
  0xa8   : > { %v3059_v13 = vpop.permute.xlu0 %699 }
  0xa9   : > { %v702_v17 = vmul.f32 %v3059_v13, %v3061_v14 }
  0xad   : > { %v3065_v16 = vpop.permute.xlu0 %705 }
  0xae   : > { %v708_v18 = vmul.f32 %v3065_v16, %v3063_v15 }
  0xb0   : > { %v709_v19 = vadd.f32 %v708_v18, %v702_v17 }
  0xb2   : > { %711 = vrot.lane.b32.xlu1 %v709_v19, %s2876_s3 }
 0x124   : > { %v712_v21 = vpop.permute.xlu1 %711 }
 0x125   : > { %v715_v24 = vsel %vm714_vm4, %v3077_v20, %v712_v21  ;;  %v3162_v21 = vld [vmem:[#allocation2 + $0xe] sm:$0x3] }
 0x126   : > { %2618 = vmatmul.mubr.msk.f32.vlgmr.msra.gmra.mxu0 %vm722_vm5, %v715_v24  ;;  %2629 = vmatmul.mubr.msk.f32.vlgmr.msra.gmra.mxu1 %vm722_vm5, %v715_v24 }
 0x127   : > { %2632 = vmatpush3.msk.msra.mxu0 %vm726_vm2, %v658_v22  ;;  %2643 = vmatpush3.msk.msra.mxu1 %vm968_vm6, %v660_v23  ;;  %v3164_v22 = vld [vmem:[#allocation2 + $0xc] sm:$0x3] }
 0x128   : > { %2633 = vmatprep.subr.mxu0 %v2874_v6  ;;  %2644 = vmatprep.subr.mxu1 %v2874_v6 }
 0x129   : > { %2634 = vmatpush3.msra.mxu0 %v657_v25  ;;  %2645 = vmatpush3.msra.mxu1 %v659_v26 }
 0x12a   : > { %2635 = vmatprep.subr.mxu0 %v2874_v6  ;;  %2646 = vmatprep.mubr.msk.f32.mxu1 %vm2875_vm3, %v2874_v6 }
 0x12b   : > { %2649 = vmatprep.subr.mxu1 %v2874_v6  ;;  %2636 = vmatpush3.msra.mxu0 %v656_v27 }
 0x12c   : > { %2647 = vmatmul.mubr.msk.f32.vlgmr.msra.gmra.mxu1 %vm964_vm7, %v3092_v28  ;;  %2637 = vmatprep.subr.mxu0 %v2874_v6 }
 0x12d   : > { %2650 = vmatpush3.msk.msra.mxu1 %vm968_vm6, %v662_v29  ;;  %2638 = vmatpush3.msra.mxu0 %v655_v30 }
 0x12e   : > { %2651 = vmatprep.subr.mxu1 %v2874_v6  ;;  %2639 = vmatprep.mubr.msk.f32.mxu0 %vm2875_vm3, %v2874_v6 }
 0x12f   : > { %2652 = vmatpush3.msra.mxu1 %v661_v31  ;;  %2640 = vmatmul.mubr.msk.f32.vlgmr.msra.gmra.mxu0 %vm722_vm5, %v715_v24 }
 0x130   : > { %2653 = vmatprep.mubr.msk.f32.mxu1 %vm2875_vm3, %v2874_v6  ;;  %2663 = vmatprep.subr.mxu1 %v2874_v6 }
 0x131   : > { %2654 = vmatmul.mubr.msk.f32.vlgmr.msra.gmra.mxu1 %vm964_vm7, %v3092_v28  ;;  %2656 = vmatprep.subr.mxu0 %v2874_v6 }
 0x132   : > { %2664 = vmatpush3.msra.mxu1 %v696_v32  ;;  %2667 = vmatprep.mubr.msk.f32.mxu1 %vm2875_vm3, %v2874_v6 }
 0x133   : > { %2665 = vmatprep.subr.mxu1 %v2874_v6  ;;  %2657 = vmatpush3.msk.msra.mxu0 %vm968_vm6, %v664_v33  ;;  %v2511_v33 = vld [vmem:[%s3009_s25 + $0x2] ss:$0 sm:$0xff] }
 0x134   : > { %2666 = vmatpush3.msra.mxu1 %v695_v34  ;;  %2658 = vmatprep.subr.mxu0 %v2874_v6 }
 0x135   : > { %2668 = vmatmul.mubr.msk.f32.vlgmr.msra.gmra.mxu1 %vm714_vm4, %v3077_v20  ;;  %2659 = vmatpush3.msra.mxu0 %v663_v35 }
 0x136   : > { %2660 = vmatprep.mubr.msk.f32.mxu0 %vm2875_vm3, %v2874_v6  ;;  %2670 = vmatprep.subr.mxu0 %v2874_v6 }
 0x137   : > { %2661 = vmatmul.mubr.msk.f32.vlgmr.msra.gmra.mxu0 %vm964_vm7, %v3092_v28  ;;  %2681 = vmatprep.subr.mxu1 %v2874_v6  ;;  %vm1504_vm7 = vcmask 228352  }
 0x138   : > { %2678 = vmatprep.mubr.msk.f32.mxu0 %vm2875_vm3, %v2874_v6  ;;  %2689 = vmatprep.mubr.msk.f32.mxu1 %vm2875_vm3, %v2874_v6 }
 0x1e6   : > { %v796_v36 = vpop.f32.mrf.mxu0  ;;  %v875_v37 = vpop.f32.mrf.mxu1 }
 0x1e7   : > { %v797_v43 = vadd.f32 %v2496_v40, %v796_v36  ;;  %v876_v54 = vadd.f32 %v2499_v49, %v875_v37  ;;  %v2502_v36 = vld [vmem:[%s3004_s22 + $0x2] ss:$0 sm:$0xff] }
 0x1e8   : > { %v2619_v38 = vpop.f32.mrf.mxu0  ;;  %v2630_v39 = vpop.f32.mrf.mxu1 }
 0x1ec   : > { %v1038_v42 = vpop.f32.mrf.mxu1 }
 0x1ed   : > { %v1039_v44 = vadd.f32 %v2505_v41, %v1038_v42 }
 0x1ee   : > { %v2648_v45 = vpop.f32.mrf.mxu1 }
 0x1ef   : > { %v1200_v46 = vadd.f32 %v1039_v44, %v797_v43  ;;  %v954_v47 = vpop.f32.mrf.mxu0 }
 0x1f0   : > { %v955_v38 = vadd.f32 %v2502_v36, %v954_v47 }
 0x1f1   : > { %v2514_v50 = vmul.f32 -1.442695, %v1200_v46  ;;  %v1117_v51 = vpop.f32.mrf.mxu1  ;;  %v2641_v52 = vpop.f32.mrf.mxu0 }
 0x1f2   : > { %v1118_v53 = vadd.f32 %v2508_v48, %v1117_v51  ;;  %v1327_v48 = vlaneseq }
 0x1f3   : > { %2797 = vpow2.f32 %v2514_v50  ;;  %v2655_v55 = vpop.f32.mrf.mxu1 }
 0x1f4   : > { %v1207_v58 = vadd.f32 %v1118_v53, %v876_v54  ;;  %v3178_v49 = vshrl.u32 %v1327_v48, 7  ;;  %v1340_v47 = vand.u32 127, %v1327_v48 }
 0x1f5   : > { %v1290_v59 = vpop.f32.mrf.mxu1 }
 0x1f6   : > { %v1295_v62 = vmul.f32 %v1290_v59, %v3140_v56  ;;  %v1294_v63 = vmul.f32 %v1290_v59, %v3142_v57  ;;  %v1297_v5 = vmul.f32 %v1290_v59, %v3144_v60  ;;  %v1296_v7 = vmul.f32 %v1290_v59, %v3146_v61 }
 0x1f7   : > { %v2669_v0 = vpop.f32.mrf.mxu1  ;;  %v1196_v2 = vpop.f32.mrf.mxu0  ;;  %v2515_v8 = vmul.f32 -1.442695, %v1207_v58  ;;  %v1299_v18 = vmul.f32 %v1290_v59, %v3154_v9  ;;  %v1298_v19 = vmul.f32 %v1290_v59, %v3156_v10  ;;  %v1301_v26 = vmul.f32 %v1290_v59, %v3162_v21 }
 0x1f8   : > { %v1306_v3 = vsel %vm1302_vm8, %v1295_v62, 0.0  ;;  %v1303_v4 = vsel %vm1302_vm8, %v1294_v63, 0.0  ;;  %v1312_v12 = vsel %vm1302_vm8, %v1297_v5, 0.0  ;;  %v1309_v17 = vsel %vm1302_vm8, %v1296_v7, 0.0 }
 0x1f9   : > { %1307 = vadd.xlane.f32.xlu0 %v1306_v3  ;;  %1304 = vadd.xlane.f32.xlu1 %v1303_v4  ;;  %v2662_v11 = vpop.f32.mrf.mxu0  ;;  %2799 = vpow2.f32 %v2515_v8  ;;  %v1318_v24 = vsel %vm1302_vm8, %v1299_v18, 0.0  ;;  %v1315_v25 = vsel %vm1302_vm8, %v1298_v19, 0.0  ;;  %v1300_v27 = vmul.f32 %v1290_v59, %v3164_v22 }
 0x1fa   : > { %v1324_v30 = vsel %vm1302_vm8, %v1301_v26, 0.0  ;;  %v1197_v35 = vadd.f32 %v2511_v33, %v1196_v2  ;;  %v1343_v50 = vsub.s32 %v1340_v47, %v3178_v49  ;;  %v1329_v8 = vstv %s2853_s17 }
 0x1fb   : > { %v1321_v31 = vsel %vm1302_vm8, %v1300_v27, 0.0  ;;  %vm1330_vm0 = vcmp.lt.s32.totalorder %v3178_v49, %v1329_v8  ;;  %v672_v8 = vld [vmem:[%s2994_s21 + $0x8] sm:$0xff] }
 0x1fd   : > { %1313 = vadd.xlane.f32.xlu0 %v1312_v12  ;;  %1310 = vadd.xlane.f32.xlu1 %v1309_v17 }
 0x200   : > { %v2798_v23 = vpop.eup %2797 }
 0x201   : > { %v1204_v29 = vadd.f32 1.0, %v2798_v23  ;;  %1319 = vadd.xlane.f32.xlu0 %v1318_v24  ;;  %1316 = vadd.xlane.f32.xlu1 %v1315_v25 }
 0x203   : > { %2801 = vrcp.f32 %v1204_v29 }
 0x205   : > { %1325 = vadd.xlane.f32.xlu0 %v1324_v30  ;;  %1322 = vadd.xlane.f32.xlu1 %v1321_v31 }
 0x206   : > { %v2800_v32 = vpop.eup %2799 }
 0x207   : > { %v1211_v34 = vadd.f32 1.0, %v2800_v32 }
 0x209   : > { %2803 = vrcp.f32 %v1211_v34 }
 0x210   : > { %v2802_v37 = vpop.eup %2801 }
 0x211   : > { %v1214_v39 = vmul.f32 %v2802_v37, %v1197_v35 }
 0x213   : > { %v1215_v40 = vadd.f32 %v1214_v39, %v955_v38 }
 0x215   : > { %2805 = vtanh.f32 %v1215_v40 }
 0x216   : > { %v2804_v41 = vpop.eup %2803 }
 0x217   : > { %v1217_v42 = vsub.f32 1.0, %v2804_v41  ;;  %v1219_v44 = vmul.f32 %v2804_v41, %v3092_v28 }
 0x222   : > { %v2806_v43 = vpop.eup %2805 }
 0x223   : > { %v1218_v45 = vmul.f32 %v2806_v43, %v1217_v42 }
 0x225   : > { %v1220_v46 = vadd.f32 %v1219_v44, %v1218_v45  ;;  %v1418_v44 = vsub.s32 1, %v3178_v49  ;;  %v1411_v45 = vsub.s32 0, %v3178_v49 }
 0x227   : > { %2261 = vst.msk [vmem:[%s2260_s20] sm:$0x3] %vm1302_vm8, %v1220_v46  ;;  %2262 = vst.msk [vmem:[#allocation3] sm:$0x3] %vm1302_vm8, %v1220_v46 }
 0x282   : > { %v1308_v51 = vpop.xlane.xlu0 %1307  ;;  %v1305_v52 = vpop.xlane.xlu1 %1304 }
 0x283   : > { %v1348_v53 = vrot.slane %v1308_v51, %v1343_v50  ;;  %v1344_v54 = vrot.slane %v1305_v52, %v1343_v50  ;;  %v1439_v51 = vsub.s32 4, %v3178_v49  ;;  %v1425_v52 = vsub.s32 2, %v3178_v49 }
 0x285   : > { %v1374_v59 = vsel %vm1373_vm9, %v1348_v53, %v1344_v54 }
 0x286   : > { %v1314_v28 = vpop.xlane.xlu0 %1313  ;;  %v1311_v55 = vpop.xlane.xlu1 %1310 }
 0x287   : > { %v1352_v58 = vrot.slane %v1311_v55, %v1343_v50  ;;  %v1356_v62 = vrot.slane %v1314_v28, %v1343_v50  ;;  %v1453_v28 = vsub.s32 6, %v3178_v49  ;;  %v1432_v55 = vsub.s32 3, %v3178_v49 }
 0x289   : > { %v1376_v63 = vsel %vm1375_vm10, %v1352_v58, %v1374_v59 }
 0x28a   : > { %v1320_v0 = vpop.xlane.xlu0 %1319  ;;  %v1317_v2 = vpop.xlane.xlu1 %1316  ;;  %v1378_v5 = vsel %vm1377_vm11, %v1356_v62, %v1376_v63  ;;  %v1446_v62 = vsub.s32 5, %v3178_v49 }
 0x28b   : > { %v1360_v3 = vrot.slane %v1317_v2, %v1343_v50  ;;  %v1364_v4 = vrot.slane %v1320_v0, %v1343_v50  ;;  %v1460_v0 = vsub.s32 7, %v3178_v49  ;;  %v674_v2 = vld [vmem:[%s2994_s21 + $0x18] sm:$0xf]  ;;  %v2001_v49 = vsub.f32 1.0, %v3031_v1 }
 0x28c   : > { %2671 = vmatpush3.msk.msra.mxu0 %vm968_vm6, %v674_v2  ;;  %v2517_v2 = vld [vmem:[%s3014_s26] ss:$0 sm:$0xff] }
 0x28d   : > { %v1380_v7 = vsel %vm1379_vm12, %v1360_v3, %v1378_v5  ;;  %v678_v3 = vld [vmem:[%s2994_s21 + $0x38] sm:$0xf]  ;;  %2672 = vmatprep.subr.mxu0 %v2874_v6 }
 0x28e   : > { %v1326_v11 = vpop.xlane.xlu0 %1325  ;;  %v1323_v12 = vpop.xlane.xlu1 %1322  ;;  %v1382_v19 = vsel %vm1381_vm13, %v1364_v4, %v1380_v7  ;;  %v673_v4 = vld [vmem:[%s2994_s21 + $0x10] sm:$0xff]  ;;  %2682 = vmatpush3.msk.msra.mxu1 %vm968_vm6, %v678_v3  ;;  %v2526_v3 = vld [vmem:[%s3019_s2] ss:$0 sm:$0xff] }
 0x28f   : > { %v1372_v17 = vrot.slane %v1326_v11, %v1343_v50  ;;  %v1368_v18 = vrot.slane %v1323_v12, %v1343_v50  ;;  %v677_v7 = vld [vmem:[%s2994_s21 + $0x30] sm:$0xff]  ;;  %2683 = vmatprep.subr.mxu1 %v2874_v6  ;;  %2673 = vmatpush3.msra.mxu0 %v673_v4  ;;  %v676_v11 = vld [vmem:[%s2994_s21 + $0x28] sm:$0xff]  ;;  %v675_v12 = vld [vmem:[%s2994_s21 + $0x20] sm:$0xff] }
 0x290   : > { %2684 = vmatpush3.msra.mxu1 %v677_v7  ;;  %2674 = vmatprep.subr.mxu0 %v2874_v6 }
 0x291   : > { %v1384_v23 = vsel %vm1383_vm14, %v1368_v18, %v1382_v19  ;;  %2685 = vmatprep.subr.mxu1 %v2874_v6  ;;  %2675 = vmatpush3.msra.mxu0 %v672_v8 }
 0x292   : > { %v1386_v24 = vsel %vm1385_vm15, %v1372_v17, %v1384_v23  ;;  %2686 = vmatpush3.msra.mxu1 %v676_v11  ;;  %2676 = vmatprep.subr.mxu0 %v2874_v6 }
 0x293   : > { %v1388_v25 = vsel %vm1330_vm0, %v1386_v24, -1e+30  ;;  %2687 = vmatprep.subr.mxu1 %v2874_v6 }
 0x294   : > { %v1390_v26 = vsel %vm1389_vm1, %v1388_v25, -inf  ;;  %2688 = vmatpush3.msra.mxu1 %v675_v12  ;;  %v2529_v12 = vld [vmem:[%s3019_s2 + $0x1] ss:$0 sm:$0xff] }
 0x295   : > { %v1391_v27 = vrot.slane %v1390_v26, 4  ;;  %2703 = vmatprep.subr.mxu1 %v2874_v6 }
 0x297   : > { %v1392_v29 = vmax.f32 %v1390_v26, %v1391_v27 }
 0x299   : > { %v1393_v30 = vrot.slane %v1392_v29, 2 }
 0x29b   : > { %v1394_v31 = vmax.f32 %v1392_v29, %v1393_v30 }
 0x29d   : > { %v1395_v32 = vrot.slane %v1394_v31, 1 }
 0x29f   : > { %v1396_v33 = vmax.f32 %v1394_v31, %v1395_v32 }
 0x2a1   : > { %v1397_v34 = vsub.f32 %v1388_v25, %v1396_v33 }
 0x2a3   : > { %v1398_v35 = vmul.f32 1.442695, %v1397_v34 }
 0x2a5   : > { %2807 = vpow2.f32 %v1398_v35 }
 0x2b2   : > { %v2808_v36 = vpop.eup %2807 }
 0x2b3   : > { %v1400_v37 = vsel %vm1389_vm1, %v2808_v36, 0.0 }
 0x2b4   : > { %v1401_v38 = vrot.slane %v1400_v37, 4 }
 0x2b6   : > { %v1402_v39 = vadd.f32 %v1401_v38, %v1400_v37 }
 0x2b8   : > { %v1403_v40 = vrot.slane %v1402_v39, 2 }
 0x2ba   : > { %v1404_v41 = vadd.f32 %v1403_v40, %v1402_v39 }
 0x2bc   : > { %v1405_v42 = vrot.slane %v1404_v41, 1 }
 0x2be   : > { %v1406_v43 = vadd.f32 %v1405_v42, %v1404_v41  ;;  %v1490_v42 = vstv %s1489_s27 }
 0x2bf   : > { %vm1491_vm5 = vcmp.eq.s32.totalorder %v1490_v42, 1 }
 0x2c0   : > { %2809 = vrcp.f32 %v1406_v43 }
 0x2cd   : > { %v2810_v46 = vpop.eup %2809 }
 0x2ce   : > { %v1408_v48 = vmul.f32 %v2810_v46, %v2808_v36 }
 0x2d0   : > { %v1419_v47 = vrot.slane %v1408_v48, %v1418_v44  ;;  %v1412_v50 = vrot.slane %v1408_v48, %v1411_v45  ;;  %v1440_v53 = vrot.slane %v1408_v48, %v1439_v51  ;;  %v1426_v54 = vrot.slane %v1408_v48, %v1425_v52  ;;  %v683_v52 = vld [vmem:[%s2999_s14] sm:$0xff] }
 0x2d1   : > { %v1454_v58 = vrot.slane %v1408_v48, %v1453_v28  ;;  %v1433_v59 = vrot.slane %v1408_v48, %v1432_v55  ;;  %v1447_v63 = vrot.slane %v1408_v48, %v1446_v62  ;;  %v1461_v5 = vrot.slane %v1408_v48, %v1460_v0  ;;  %v685_v28 = vld [vmem:[%s2999_s14 + $0x10] sm:$0xff]  ;;  %v688_v55 = vld [vmem:[%s2999_s14 + $0x28] sm:$0x3] }
 0x2d2   : > { %1421 = vbcast.lane.b32.xlu0 %v1419_v47, 256  ;;  %1414 = vbcast.lane.b32.xlu1 %v1412_v50, 256  ;;  %v682_v47 = vld [vmem:[%s2994_s21 + $0x58] sm:$0xf]  ;;  %v684_v50 = vld [vmem:[%s2999_s14 + $0x8] sm:$0x3] }
 0x2d6   : > { %1442 = vbcast.lane.b32.xlu0 %v1440_v53, 256  ;;  %1428 = vbcast.lane.b32.xlu1 %v1426_v54, 256  ;;  %v680_v53 = vld [vmem:[%s2994_s21 + $0x48] sm:$0xff]  ;;  %v679_v54 = vld [vmem:[%s2994_s21 + $0x40] sm:$0xff] }
 0x2da   : > { %1456 = vbcast.lane.b32.xlu0 %v1454_v58, 256  ;;  %1435 = vbcast.lane.b32.xlu1 %v1433_v59, 256  ;;  %v687_v58 = vld [vmem:[%s2999_s14 + $0x20] sm:$0xff] }
 0x2de   : > { %1449 = vbcast.lane.b32.xlu1 %v1447_v63, 256 }
 0x2e2   : > { %1463 = vbcast.lane.b32.xlu1 %v1461_v5, 256 }
 0x2e6   : > { %2004 = vperm.xlu1 %2796, %v2001_v49  }
 0x344   : > { %v1422_v17 = vpop.permute.xlu0 %1421  ;;  %v1415_v18 = vpop.permute.xlu1 %1414 }
 0x345   : > { %v1466_v19 = vmul.f32 %v1422_v17, %v3140_v56  ;;  %v1465_v1 = vmul.f32 %v1415_v18, %v3142_v57  ;;  %v671_v57 = vld [vmem:[%s2994_s21] sm:$0xff] }
 0x346   : > { %2677 = vmatpush3.msra.mxu0 %v671_v57  ;;  %v2520_v17 = vld [vmem:[%s3014_s26 + $0x1] ss:$0 sm:$0xff] }
 0x347   : > { %v1474_v25 = vsel %vm1302_vm8, %v1466_v19, 0.0  ;;  %v1473_v26 = vsel %vm1302_vm8, %v1465_v1, 0.0  ;;  %2692 = vmatprep.subr.mxu0 %v2874_v6 }
 0x348   : > { %v1443_v23 = vpop.permute.xlu0 %1442  ;;  %v1429_v24 = vpop.permute.xlu1 %1428  ;;  %v1475_v30 = vadd.f32 %v1474_v25, %v1473_v26 }
 0x349   : > { %v1467_v27 = vmul.f32 %v1429_v24, %v3146_v61  ;;  %v1469_v32 = vmul.f32 %v1443_v23, %v3156_v10 }
 0x34b   : > { %v1476_v29 = vsel %vm1302_vm8, %v1467_v27, 0.0  ;;  %v1480_v61 = vsel %vm1302_vm8, %v1469_v32, 0.0 }
 0x34c   : > { %v1436_v31 = vpop.permute.xlu1 %1435  ;;  %v1477_v56 = vadd.f32 %v1476_v29, %v1475_v30  ;;  %v1457_v34 = vpop.permute.xlu0 %1456 }
 0x34d   : > { %v1468_v33 = vmul.f32 %v1436_v31, %v3144_v60  ;;  %v1471_v38 = vmul.f32 %v1457_v34, %v3164_v22 }
 0x34f   : > { %v1478_v35 = vsel %vm1302_vm8, %v1468_v33, 0.0  ;;  %v1484_v43 = vsel %vm1302_vm8, %v1471_v38, 0.0 }
 0x350   : > { %v1479_v36 = vadd.f32 %v1478_v35, %v1477_v56  ;;  %v1450_v37 = vpop.permute.xlu1 %1449 }
 0x351   : > { %v1470_v39 = vmul.f32 %v1450_v37, %v3154_v9 }
 0x352   : > { %v1481_v10 = vadd.f32 %v1480_v61, %v1479_v36 }
 0x353   : > { %v1482_v60 = vsel %vm1302_vm8, %v1470_v39, 0.0 }
 0x354   : > { %v1483_v40 = vadd.f32 %v1482_v60, %v1481_v10  ;;  %v1464_v41 = vpop.permute.xlu1 %1463 }
 0x355   : > { %v1472_v44 = vmul.f32 %v1464_v41, %v3162_v21  ;;  %v681_v21 = vld [vmem:[%s2994_s21 + $0x50] sm:$0xff]  ;;  %v2532_v41 = vld [vmem:[%s3019_s2 + $0x2] ss:$0 sm:$0xff] }
 0x356   : > { %v1485_v45 = vadd.f32 %v1484_v43, %v1483_v40 }
 0x357   : > { %v1486_v46 = vsel %vm1302_vm8, %v1472_v44, 0.0  ;;  %v2523_v44 = vld [vmem:[%s3014_s26 + $0x2] ss:$0 sm:$0xff] }
 0x358   : > { %v1487_v22 = vadd.f32 %v1486_v46, %v1485_v45 }
 0x35a   : > { %v1492_v9 = vsel %vm1491_vm5, %v1487_v22, 0.0 }
 0x35b   : > { %1494 = vrot.lane.b32.xlu0 %v1492_v9, %s2876_s3 }
 0x35f   : > { %2249 = vperm.xlu0 %2795, %v2001_v49  }
 0x3cd   : > { %v1495_v48 = vpop.permute.xlu0 %1494 }
 0x3ce   : > { %v1497_v51 = vsel %vm714_vm4, %v3077_v20, %v1495_v48  ;;  %vm1745_vm4 = vcmask 80896   ;;  %v686_v20 = vld [vmem:[%s2999_s14 + $0x18] sm:$0x3] }
 0x3cf   : > { %2679 = vmatmul.mubr.msk.f32.vlgmr.msra.gmra.mxu0 %vm1504_vm7, %v1497_v51  ;;  %2690 = vmatmul.mubr.msk.f32.vlgmr.msra.gmra.mxu1 %vm1504_vm7, %v1497_v51 }
 0x3d0   : > { %2693 = vmatpush3.msk.msra.mxu0 %vm968_vm6, %v682_v47  ;;  %2704 = vmatpush3.msk.msra.mxu1 %vm726_vm2, %v684_v50 }
 0x3d1   : > { %2694 = vmatprep.subr.mxu0 %v2874_v6  ;;  %2705 = vmatprep.subr.mxu1 %v2874_v6 }
 0x3d2   : > { %2695 = vmatpush3.msra.mxu0 %v681_v21  ;;  %2706 = vmatpush3.msra.mxu1 %v683_v52 }
 0x3d3   : > { %2696 = vmatprep.subr.mxu0 %v2874_v6  ;;  %2707 = vmatprep.mubr.msk.f32.mxu1 %vm2875_vm3, %v2874_v6 }
 0x3d4   : > { %2710 = vmatprep.subr.mxu1 %v2874_v6  ;;  %2697 = vmatpush3.msra.mxu0 %v680_v53 }
 0x3d5   : > { %2708 = vmatmul.mubr.msk.f32.vlgmr.msra.gmra.mxu1 %vm1745_vm4, %v3061_v14  ;;  %2698 = vmatprep.subr.mxu0 %v2874_v6 }
 0x3d6   : > { %2711 = vmatpush3.msk.msra.mxu1 %vm726_vm2, %v686_v20  ;;  %2699 = vmatpush3.msra.mxu0 %v679_v54 }
 0x3d7   : > { %2712 = vmatprep.subr.mxu1 %v2874_v6  ;;  %2700 = vmatprep.mubr.msk.f32.mxu0 %vm2875_vm3, %v2874_v6 }
 0x3d8   : > { %2713 = vmatpush3.msra.mxu1 %v685_v28  ;;  %2701 = vmatmul.mubr.msk.f32.vlgmr.msra.gmra.mxu0 %vm1504_vm7, %v1497_v51 }
 0x3d9   : > { %2714 = vmatprep.mubr.msk.f32.mxu1 %vm2875_vm3, %v2874_v6  ;;  %2717 = vmatprep.subr.mxu0 %v2874_v6 }
 0x3da   : > { %2724 = vmatprep.subr.mxu1 %v2874_v6  ;;  %2715 = vmatmul.mubr.msk.f32.vlgmr.msra.gmra.mxu1 %vm1745_vm4, %v3061_v14 }
 0x3db   : > { %2718 = vmatpush3.msk.msra.mxu0 %vm726_vm2, %v688_v55  ;;  %2725 = vmatpush3.msk.msra.mxu1 %vm726_vm2, %v684_v50 }
 0x3dc   : > { %2719 = vmatprep.subr.mxu0 %v2874_v6  ;;  %2726 = vmatprep.subr.mxu1 %v2874_v6 }
 0x3dd   : > { %2720 = vmatpush3.msra.mxu0 %v687_v58  ;;  %2721 = vmatprep.mubr.msk.f32.mxu0 %vm2875_vm3, %v2874_v6 }
 0x3de   : > { %2727 = vmatpush3.msra.mxu1 %v683_v52  ;;  %2728 = vmatprep.mubr.msk.f32.mxu1 %vm2875_vm3, %v2874_v6 }
 0x3df   : > { %2722 = vmatmul.mubr.msk.f32.vlgmr.msra.gmra.mxu0 %vm1745_vm4, %v3061_v14  ;;  %2731 = vmatprep.subr.mxu0 %v2874_v6 }
 0x3e0   : > { %2729 = vmatmul.mubr.msk.f32.vlgmr.msra.gmra.mxu1 %vm1745_vm4, %v3063_v15  ;;  %2732 = vmatpush3.msk.msra.mxu0 %vm726_vm2, %v686_v20 }
 0x3e1   : > { %2733 = vmatprep.subr.mxu0 %v2874_v6  ;;  %2735 = vmatprep.mubr.msk.f32.mxu0 %vm2875_vm3, %v2874_v6 }
 0x3e2   : > { %2734 = vmatpush3.msra.mxu0 %v685_v28  ;;  %2738 = vmatprep.subr.mxu1 %v2874_v6 }
 0x3e3   : > { %2736 = vmatmul.mubr.msk.f32.vlgmr.msra.gmra.mxu0 %vm1745_vm4, %v3063_v15  ;;  %2739 = vmatpush3.msk.msra.mxu1 %vm726_vm2, %v688_v55  ;;  %v2005_v55 = vpop.permute.xlu1 %2004  ;;  %vm2010_vm2 = vcmask 74752  }
 0x3e4   : > { %2740 = vmatprep.subr.mxu1 %v2874_v6  ;;  %2742 = vmatprep.mubr.msk.f32.mxu1 %vm2875_vm3, %v2874_v6 }
 0x3e5   : > { %2741 = vmatpush3.msra.mxu1 %v687_v58 }
 0x3e6   : > { %2743 = vmatmul.mubr.msk.f32.vlgmr.msra.gmra.mxu1 %vm1745_vm4, %v3063_v15 }
 0x48f   : > { %v1577_v59 = vpop.f32.mrf.mxu0  ;;  %v1656_v62 = vpop.f32.mrf.mxu1 }
 0x490   : > { %v1578_v5 = vadd.f32 %v2517_v2, %v1577_v59  ;;  %v1657_v23 = vadd.f32 %v2520_v17, %v1656_v62 }
 0x491   : > { %v2680_v63 = vpop.f32.mrf.mxu0  ;;  %v2691_v0 = vpop.f32.mrf.mxu1 }
 0x492   : > { %v2007_v63 = vmul.f32 %v2005_v55, %v3061_v14 }
 0x495   : > { %v1818_v4 = vpop.f32.mrf.mxu1 }
 0x496   : > { %v1819_v7 = vadd.f32 %v2526_v3, %v1818_v4 }
 0x497   : > { %v2709_v8 = vpop.f32.mrf.mxu1 }
 0x498   : > { %v1980_v11 = vadd.f32 %v1819_v7, %v1578_v5  ;;  %v1735_v49 = vpop.f32.mrf.mxu0 }
 0x499   : > { %v1736_v22 = vadd.f32 %v2523_v44, %v1735_v49 }
 0x49a   : > { %v2535_v6 = vmul.f32 -1.442695, %v1980_v11  ;;  %v1897_v18 = vpop.f32.mrf.mxu1  ;;  %v2702_v19 = vpop.f32.mrf.mxu0 }
 0x49b   : > { %v1898_v1 = vadd.f32 %v2529_v12, %v1897_v18  ;;  %v2250_v11 = vpop.permute.xlu0 %2249 }
 0x49c   : > { %2811 = vpow2.f32 %v2535_v6  ;;  %v2716_v24 = vpop.f32.mrf.mxu1 }
 0x49d   : > { %v1987_v25 = vadd.f32 %v1898_v1, %v1657_v23 }
 0x49f   : > { %v1976_v26 = vpop.f32.mrf.mxu0  ;;  %v2536_v31 = vmul.f32 -1.442695, %v1987_v25 }
 0x4a0   : > { %v2083_v27 = vpop.f32.mrf.mxu1  ;;  %v1977_v45 = vadd.f32 %v2532_v41, %v1976_v26 }
 0x4a1   : > { %v2084_v29 = vadd.f32 %v2526_v3, %v2083_v27  ;;  %v2723_v30 = vpop.f32.mrf.mxu0  ;;  %2813 = vpow2.f32 %v2536_v31 }
 0x4a2   : > { %v2730_v32 = vpop.f32.mrf.mxu1 }
 0x4a3   : > { %v2227_v33 = vadd.f32 %v2084_v29, %v1578_v5  ;;  %v2153_v56 = vpop.f32.mrf.mxu0 }
 0x4a4   : > { %v2154_v57 = vadd.f32 %v2529_v12, %v2153_v56  ;;  %v2252_v12 = vmul.f32 %v2250_v11, %v3063_v15 }
 0x4a5   : > { %v2543_v34 = vmul.f32 -1.442695, %v2227_v33  ;;  %v2737_v35 = vpop.f32.mrf.mxu0 }
 0x4a6   : > { %v2223_v36 = vpop.f32.mrf.mxu1  ;;  %v2234_v38 = vadd.f32 %v2154_v57, %v1657_v23 }
 0x4a7   : > { %2815 = vpow2.f32 %v2543_v34  ;;  %v2224_v51 = vadd.f32 %v2532_v41, %v2223_v36 }
 0x4a8   : > { %v2744_v37 = vpop.f32.mrf.mxu1  ;;  %v2544_v10 = vmul.f32 -1.442695, %v2234_v38 }
 0x4a9   : > { %v2812_v61 = vpop.eup %2811 }
 0x4aa   : > { %v1984_v39 = vadd.f32 1.0, %v2812_v61 }
 0x4ac   : > { %2817 = vrcp.f32 %v1984_v39 }
 0x4ad   : > { %2819 = vpow2.f32 %v2544_v10 }
 0x4ae   : > { %v2814_v60 = vpop.eup %2813 }
 0x4af   : > { %v1991_v43 = vadd.f32 1.0, %v2814_v60 }
 0x4b4   : > { %v2816_v40 = vpop.eup %2815 }
 0x4b5   : > { %v2231_v42 = vadd.f32 1.0, %v2816_v40 }
 0x4b7   : > { %2821 = vrcp.f32 %v2231_v42 }
 0x4b8   : > { %2823 = vrcp.f32 %v1991_v43 }
 0x4b9   : > { %v2818_v46 = vpop.eup %2817 }
 0x4ba   : > { %v1994_v9 = vmul.f32 %v2818_v46, %v1977_v45  ;;  %v2820_v47 = vpop.eup %2819 }
 0x4bb   : > { %v2238_v50 = vadd.f32 1.0, %v2820_v47 }
 0x4bc   : > { %v1995_v48 = vadd.f32 %v1994_v9, %v1736_v22 }
 0x4be   : > { %2825 = vtanh.f32 %v1995_v48 }
 0x4bf   : > { %2827 = vrcp.f32 %v2238_v50 }
 0x4c4   : > { %v2822_v21 = vpop.eup %2821 }
 0x4c5   : > { %v2241_v52 = vmul.f32 %v2822_v21, %v2224_v51  ;;  %v2824_v53 = vpop.eup %2823 }
 0x4c6   : > { %v1997_v54 = vsub.f32 1.0, %v2824_v53  ;;  %v1999_v59 = vmul.f32 %v2824_v53, %v3061_v14 }
 0x4c7   : > { %v2242_v20 = vadd.f32 %v2241_v52, %v1736_v22 }
 0x4c9   : > { %2829 = vtanh.f32 %v2242_v20 }
 0x4cb   : > { %v2826_v28 = vpop.eup %2825 }
 0x4cc   : > { %v1998_v58 = vmul.f32 %v2826_v28, %v1997_v54  ;;  %v2828_v2 = vpop.eup %2827 }
 0x4cd   : > { %v2244_v4 = vsub.f32 1.0, %v2828_v2  ;;  %v2246_v8 = vmul.f32 %v2828_v2, %v3063_v15 }
 0x4ce   : > { %v2000_v62 = vadd.f32 %v1999_v59, %v1998_v58 }
 0x4d0   : > { %v2008_v0 = vmul.f32 %v2000_v62, %v3059_v13 }
 0x4d2   : > { %v2009_v3 = vadd.f32 %v2008_v0, %v2007_v63 }
 0x4d4   : > { %2011 = vst.msk [vmem:[#allocation4] sm:$0x3] %vm2010_vm2, %v2009_v3  ;;  %v2012_v6 = vmul.f32 %v2009_v3, %v3059_v13 }
 0x4d6   : > { %v2830_v5 = vpop.eup %2829 }
 0x4d7   : > { %v2245_v7 = vmul.f32 %v2830_v5, %v2244_v4 }
 0x4d9   : > { %v2247_v49 = vadd.f32 %v2246_v8, %v2245_v7 }
 0x4db   : > { %v2253_v17 = vmul.f32 %v2247_v49, %v3065_v16 }
 0x4dd   : > { %v2254_v14 = vadd.f32 %v2253_v17, %v2252_v12 }
 0x4df   : > { %2256 = vst.msk [vmem:[#allocation4 + $0x2] sm:$0x3] %vm2010_vm2, %v2254_v14  ;;  %v2257_v18 = vmul.f32 %v2254_v14, %v3065_v16 }
 0x4e1   : > { %v2258_v19 = vadd.f32 %v2257_v18, %v2012_v6 }
 0x4e3   : > { %2263 = vst.msk [vmem:[%s616_s15] sm:$0x3] %vm2010_vm2, %v2258_v19 }
 0x4e4 PF: > { %s3361_s14 = sld [smem:[#allocation7_spill]] }
 0x4e5   : > { %s3362_s17 = sld [smem:[#allocation5_spill]] }
 0x4e6   : > { %s3363_s18 = sld [smem:[#allocation6_spill]] }
 0x4e7   : > { %s3364_s19 = sld [smem:[#allocation8_spill]] }
 0x4e8   : > { %s3365_s20 = sld [smem:[#allocation9_spill]] }
 0x4ea   : > { %s21_s21 = sadd.s32 1, %s3361_s14  }
 0x4eb   : > { %p18_p9 = scmp.ge.s32.totalorder %s21_s21, 18  }
 0x4ed   :  { %20 = sbr.rel (!%p18_p9) target bundleno = 6 (0x6), region = 130 }

</bundles_post_ra>
